<compile_context>
chip_gen: v7x
topology: tpu7x:2x2x1
jax: 0.10.0
libtpu: 0.0.40
codegen_flags: <defaults>
</compile_context>

<pallas_src>
import functools

import numpy as np
import jax
import jax.numpy as jnp
from jax import lax
from jax.experimental import pallas as pl
from jax.experimental.pallas import tpu as pltpu

_EPS = 1e-5
_SLOPE = 0.2


def _round_up(x, m):
    return ((x + m - 1) // m) * m


def _compiler_params():
    return pltpu.CompilerParams(
        dimension_semantics=("parallel",),
        vmem_limit_bytes=32 * 1024 * 1024,
    )


@functools.lru_cache(maxsize=None)
def _row_wrap_masks(H, W):
    """(3, H*W) f32 masks: row dx zeroes lanes whose neighbour (x+dx-1) leaves [0, W)."""
    col = np.arange(H * W) % W
    m = np.ones((3, H * W), np.float32)
    m[0] = (col >= 1).astype(np.float32)       # dx = 0 -> needs x-1 >= 0
    m[2] = (col <= W - 2).astype(np.float32)   # dx = 2 -> needs x+1 <  W
    return jnp.asarray(m)


@functools.lru_cache(maxsize=None)
def _pool_matrix(H, W):
    """(H*W, (H/2)*(W/2)) f32 matrix implementing AvgPool2d(kernel=2, stride=2)."""
    Ho, Wo = H // 2, W // 2
    q = np.arange(H * W)
    P = np.zeros((H * W, Ho * Wo), np.float32)
    P[q, (q // W // 2) * Wo + (q % W) // 2] = 0.25
    return jnp.asarray(P)


# ----------------------------- Pallas kernels ----------------------------------


def _double_conv_kernel(x_ref, w1_ref, w2_ref, m_ref, o_ref, pad1_ref, pad2_ref,
                        *, W, hw, halo, eps, slope):
    """Fused ConvBlock body for one batch element, all in (C, H*W) layout.

    x_ref : (1, Cin, H*W)       input image, flattened spatial
    w1_ref: (Cmid, 9*Cin)       conv1 weights, columns ordered (dy*3+dx)*Cin + cin
    w2_ref: (Cout, 9*Cmid)      conv2 weights
    m_ref : (3, H*W)            horizontal row-wrap masks (per dx)
    o_ref : (1, Cout, H*W)      output (lane-dense)
    pad?_ref: (C, halo+H*W+halo) zero-haloed flat scratch images (VMEM)
    """

    def conv3x3(pad_ref, w):
        pieces = []
        for k in range(9):
            dy, dx = k // 3, k % 3
            off = (dy - 1) * W + (dx - 1)
            start = halo + off
            piece = pad_ref[:, start:start + hw]          # (C, hw) shifted view
            if dx == 0:
                piece = piece * m_ref[0:1, :]
            elif dx == 2:
                piece = piece * m_ref[2:3, :]
            pieces.append(piece)
        slab = jnp.concatenate(pieces, axis=0)            # (9*C, hw) im2col slab
        # single MXU matmul, K = 9*C, lane dim = hw
        return jnp.dot(w, slab, preferred_element_type=jnp.float32)

    def inorm_lrelu(t):
        inv_hw = 1.0 / hw
        mean = jnp.sum(t, axis=1, keepdims=True) * inv_hw
        ctr = t - mean
        var = jnp.sum(ctr * ctr, axis=1, keepdims=True) * inv_hw
        y = ctr * jax.lax.rsqrt(var + eps)
        return jnp.where(y >= 0, y, slope * y)

    # ---- conv1 + InstanceNorm + LeakyReLU (+ Dropout2d identity) ----
    pad1_ref[...] = jnp.zeros_like(pad1_ref)
    pad1_ref[:, halo:halo + hw] = x_ref[0].astype(jnp.float32)
    y1 = inorm_lrelu(conv3x3(pad1_ref, w1_ref[...].astype(jnp.float32)))
    # TODO(synk): Dropout2d is identity here (inference semantics); training-mode
    # channel dropout would need pltpu.prng_* plus 1/(1-p) rescaling.

    # ---- conv2 + InstanceNorm + LeakyReLU (intermediate stays in VMEM) ----
    pad2_ref[...] = jnp.zeros_like(pad2_ref)
    pad2_ref[:, halo:halo + hw] = y1
    y2 = inorm_lrelu(conv3x3(pad2_ref, w2_ref[...].astype(jnp.float32)))

    o_ref[0] = y2.astype(o_ref.dtype)


def _proj_in_lrelu_kernel(x_ref, w_ref, o_ref, *, taps, cout, eps, slope):
    """Pointwise projection (1x1 conv or 2x2 transpose-conv taps) + IN + LeakyReLU.

    x_ref: (1, Cin, hw);  w_ref: (taps*Cout, Cin);  o_ref: (1, taps*Cout, hw).
    InstanceNorm statistics pool the `taps` row groups of each output channel.
    """
    x = x_ref[0].astype(jnp.float32)                       # (Cin, hw)
    w = w_ref[...].astype(jnp.float32)                     # (taps*Cout, Cin)
    t = jnp.dot(w, x, preferred_element_type=jnp.float32)  # (taps*Cout, hw)
    hw = t.shape[1]
    n = taps * hw

    s1 = jnp.sum(t, axis=1, keepdims=True)                 # (taps*Cout, 1)
    mean = sum(s1[k * cout:(k + 1) * cout] for k in range(taps)) * (1.0 / n)
    ctr = t - jnp.concatenate([mean] * taps, axis=0)
    s2 = jnp.sum(ctr * ctr, axis=1, keepdims=True)
    var = sum(s2[k * cout:(k + 1) * cout] for k in range(taps)) * (1.0 / n)
    inv = jax.lax.rsqrt(var + eps)
    y = ctr * jnp.concatenate([inv] * taps, axis=0)
    y = jnp.where(y >= 0, y, slope * y)

    o_ref[0] = y.astype(o_ref.dtype)


def _avgpool_kernel(x_ref, p_ref, o_ref):
    """AvgPool2d(2,2) as a single matmul with a constant pooling matrix."""
    o_ref[0] = jnp.dot(
        x_ref[0].astype(jnp.float32), p_ref[...],
        preferred_element_type=jnp.float32).astype(o_ref.dtype)


# ----------------------------- module wrappers ----------------------------------


def conv_block(x, w1, w2):
    """ConvBlock.forward: (Conv3x3 -> IN -> LeakyReLU(0.2) -> Dropout2d) x 2, fused."""
    N, Cin, H, W = x.shape
    Cmid, Cout = w1.shape[0], w2.shape[0]
    hw = H * W
    halo = _round_up(W + 1, 128)          # 128-aligned zero halo around the flat image
    L = halo + hw + halo

    xf = x.reshape(N, Cin, hw)
    # w[cout, cin, dy, dx] -> wt[cout, (dy*3+dx)*cin_ch + cin]
    w1t = jnp.transpose(w1, (0, 2, 3, 1)).reshape(Cmid, 9 * Cin)
    w2t = jnp.transpose(w2, (0, 2, 3, 1)).reshape(Cout, 9 * Cmid)
    masks = _row_wrap_masks(H, W)

    kernel = functools.partial(_double_conv_kernel, W=W, hw=hw, halo=halo,
                               eps=_EPS, slope=_SLOPE)
    out = pl.pallas_call(
        kernel,
        out_shape=jax.ShapeDtypeStruct((N, Cout, hw), x.dtype),
        grid=(N,),
        in_specs=[
            pl.BlockSpec((1, Cin, hw), lambda b: (b, 0, 0)),
            pl.BlockSpec((Cmid, 9 * Cin), lambda b: (0, 0)),
            pl.BlockSpec((Cout, 9 * Cmid), lambda b: (0, 0)),
            pl.BlockSpec((3, hw), lambda b: (0, 0)),
        ],
        out_specs=pl.BlockSpec((1, Cout, hw), lambda b: (b, 0, 0)),
        scratch_shapes=[pltpu.VMEM((Cin, L), jnp.float32),
                        pltpu.VMEM((Cmid, L), jnp.float32)],
        compiler_params=_compiler_params(),
    )(xf, w1t, w2t, masks)
    return out.reshape(N, Cout, H, W)


def avg_pool2x2(x):
    """nn.AvgPool2d(kernel_size=2, stride=2, padding=0)."""
    N, C, H, W = x.shape
    Ho, Wo = H // 2, W // 2
    xf = x.reshape(N, C, H * W)
    out = pl.pallas_call(
        _avgpool_kernel,
        out_shape=jax.ShapeDtypeStruct((N, C, Ho * Wo), x.dtype),
        grid=(N,),
        in_specs=[pl.BlockSpec((1, C, H * W), lambda b: (b, 0, 0)),
                  pl.BlockSpec((H * W, Ho * Wo), lambda b: (0, 0))],
        out_specs=pl.BlockSpec((1, C, Ho * Wo), lambda b: (b, 0, 0)),
        compiler_params=_compiler_params(),
    )(xf, _pool_matrix(H, W))
    return out.reshape(N, C, Ho, Wo)


def transpose_conv_block(x, w):
    """TransposeConvBlock.forward: ConvTranspose2d(k=2, s=2, no bias) -> IN -> LeakyReLU."""
    N, Cin, H, W = x.shape
    Cout = w.shape[1]
    hw = H * W
    # w[cin, cout, dy, dx] -> wt[(dy*2+dx)*Cout + cout, cin]
    wt = jnp.transpose(w, (2, 3, 1, 0)).reshape(4 * Cout, Cin)
    xf = x.reshape(N, Cin, hw)

    kernel = functools.partial(_proj_in_lrelu_kernel, taps=4, cout=Cout,
                               eps=_EPS, slope=_SLOPE)
    t = pl.pallas_call(
        kernel,
        out_shape=jax.ShapeDtypeStruct((N, 4 * Cout, hw), x.dtype),
        grid=(N,),
        in_specs=[pl.BlockSpec((1, Cin, hw), lambda b: (b, 0, 0)),
                  pl.BlockSpec((4 * Cout, Cin), lambda b: (0, 0))],
        out_specs=pl.BlockSpec((1, 4 * Cout, hw), lambda b: (b, 0, 0)),
        compiler_params=_compiler_params(),
    )(xf, wt)

    # Interleave the 4 sub-pixel taps: out[n, c, 2i+dy, 2j+dx] = t[n, (dy*2+dx)*C+c, i*W+j].
    t = t.reshape(N, 2, 2, Cout, H, W)
    t = jnp.transpose(t, (0, 3, 4, 1, 5, 2))
    return t.reshape(N, Cout, 2 * H, 2 * W)


def final_conv_block(x, w):
    """Unet2d.final_conv (output_bias=False): Conv2d 1x1 (no bias) -> IN -> LeakyReLU."""
    N, Cin, H, W = x.shape
    Cout = w.shape[0]
    hw = H * W
    wt = w.reshape(Cout, Cin)
    xf = x.reshape(N, Cin, hw)

    kernel = functools.partial(_proj_in_lrelu_kernel, taps=1, cout=Cout,
                               eps=_EPS, slope=_SLOPE)
    out = pl.pallas_call(
        kernel,
        out_shape=jax.ShapeDtypeStruct((N, Cout, hw), x.dtype),
        grid=(N,),
        in_specs=[pl.BlockSpec((1, Cin, hw), lambda b: (b, 0, 0)),
                  pl.BlockSpec((Cout, Cin), lambda b: (0, 0))],
        out_specs=pl.BlockSpec((1, Cout, hw), lambda b: (b, 0, 0)),
        compiler_params=_compiler_params(),
    )(xf, wt)
    return out.reshape(N, Cout, H, W)


# ----------------------------- parameters & forward -----------------------------


def _conv_block_params(key, cin, cout):
    k1, k2 = jax.random.split(key)
    b1 = 1.0 / np.sqrt(cin * 9)
    b2 = 1.0 / np.sqrt(cout * 9)
    return {"w1": jax.random.uniform(k1, (cout, cin, 3, 3), jnp.float32, -b1, b1),
            "w2": jax.random.uniform(k2, (cout, cout, 3, 3), jnp.float32, -b2, b2)}


def _level_params(key, child, in_planes, out_planes):
    kl, ku, kr = jax.random.split(key, 3)
    p = {"left": _conv_block_params(kl, in_planes, out_planes),
         "child": child,
         "out_planes": out_planes}
    if child is not None:
        cin_up = child["out_planes"]
        bu = 1.0 / np.sqrt(cin_up * 4)
        p["up_w"] = jax.random.uniform(ku, (cin_up, out_planes, 2, 2),
                                       jnp.float32, -bu, bu)
        p["right"] = _conv_block_params(kr, 2 * out_planes, out_planes)
    return p


def init_unet2d_params(key, in_chans, out_chans, chans, num_pool_layers):
    keys = jax.random.split(key, num_pool_layers + 2)
    planes = 2 ** num_pool_layers
    layer = None
    for i in range(num_pool_layers):
        planes //= 2
        layer = _level_params(keys[i], layer, planes * chans, 2 * planes * chans)
    layer = _level_params(keys[num_pool_layers], layer, in_chans, chans)
    bf = 1.0 / np.sqrt(chans)
    final_w = jax.random.uniform(keys[-1], (out_chans, chans, 1, 1),
                                 jnp.float32, -bf, bf)
    return {"layer": layer, "final_w": final_w, "factor": 2 ** num_pool_layers}


def _unet_level_forward(x, p):
    y = conv_block(x, p["left"]["w1"], p["left"]["w2"])
    if p["child"] is not None:
        down = avg_pool2x2(y)
        child_out = _unet_level_forward(down, p["child"])
        up = transpose_conv_block(child_out, p["up_w"])
        y = conv_block(jnp.concatenate([y, up], axis=1),
                       p["right"]["w1"], p["right"]["w2"])
    return y


def unet2d_forward(x, params):
    factor = params["factor"]
    N, C, H, W = x.shape
    pad_h = (factor - (H - factor)) % factor
    pad_w = (factor - (W - factor)) % factor
    if pad_h or pad_w:
        x = jnp.pad(x, ((0, 0), (0, 0), (0, pad_h), (0, pad_w)), mode="reflect")
    y = _unet_level_forward(x, params["layer"])
    y = final_conv_block(y, params["final_w"])
    return y[:, :, :H, :W]


# ----------------------------- plain-JAX reference ------------------------------


def _ref_in_lrelu(y):
    mean = jnp.mean(y, axis=(2, 3), keepdims=True)
    var = jnp.mean((y - mean) ** 2, axis=(2, 3), keepdims=True)
    y = (y - mean) * jax.lax.rsqrt(var + _EPS)
    return jnp.where(y >= 0, y, _SLOPE * y)


def _ref_conv3x3(x, w):
    return lax.conv_general_dilated(
        x, w, (1, 1), ((1, 1), (1, 1)),
        dimension_numbers=("NCHW", "OIHW", "NCHW"),
        precision=lax.Precision.HIGHEST)


def _ref_conv_block(x, w1, w2):
    return _ref_in_lrelu(_ref_conv3x3(_ref_in_lrelu(_ref_conv3x3(x, w1)), w2))


def _ref_avgpool(x):
    N, C, H, W = x.shape
    return x.reshape(N, C, H // 2, 2, W // 2, 2).mean(axis=(3, 5))


def _ref_transpose_conv_block(x, w):
    N, _, H, W = x.shape
    Cout = w.shape[1]
    t = jnp.einsum("nchw,cokl->noklhw", x, w, precision=lax.Precision.HIGHEST)
    t = jnp.transpose(t, (0, 1, 4, 2, 5, 3)).reshape(N, Cout, 2 * H, 2 * W)
    return _ref_in_lrelu(t)


def _ref_level(x, p):
    y = _ref_conv_block(x, p["left"]["w1"], p["left"]["w2"])
    if p["child"] is not None:
        d = _ref_avgpool(y)
        c = _ref_level(d, p["child"])
        u = _ref_transpose_conv_block(c, p["up_w"])
        y = _ref_conv_block(jnp.concatenate([y, u], axis=1),
                            p["right"]["w1"], p["right"]["w2"])
    return y


def _ref_unet2d(x, params):
    factor = params["factor"]
    N, C, H, W = x.shape
    pad_h = (factor - (H - factor)) % factor
    pad_w = (factor - (W - factor)) % factor
    if pad_h or pad_w:
        x = jnp.pad(x, ((0, 0), (0, 0), (0, pad_h), (0, pad_w)), mode="reflect")
    y = _ref_level(x, params["layer"])
    y = lax.conv_general_dilated(
        y, params["final_w"], (1, 1), ((0, 0), (0, 0)),
        dimension_numbers=("NCHW", "OIHW", "NCHW"),
        precision=lax.Precision.HIGHEST)
    return _ref_in_lrelu(y)[:, :, :H, :W]


# ------------------------------------ main ---------------------------------------

if __name__ == "__main__":
    # Small Unet2d: in_chans=8, out_chans=8, chans=8, num_pool_layers=2, drop_prob=0.
    # (channel counts chosen as multiples of 8 for aligned sublane tiling)
    N, in_chans, out_chans, chans, num_pool_layers = 2, 8, 8, 8, 2
    H = W = 16

    key = jax.random.PRNGKey(0)
    kx, kp = jax.random.split(key)
    x = jax.random.normal(kx, (N, in_chans, H, W), dtype=jnp.float32)
    params = init_unet2d_params(kp, in_chans, out_chans, chans, num_pool_layers)

    out = jax.block_until_ready(unet2d_forward(x, params))
    assert out.shape == (N, out_chans, H, W), out.shape

    ref = jax.block_until_ready(_ref_unet2d(x, params))
    np.testing.assert_allclose(np.asarray(out), np.asarray(ref), rtol=2e-3, atol=2e-3)

    print("KERNEL_OK")
</pallas_src>

<mosaic_0001>
module attributes {stable_mosaic.version = 11 : i64} {
  func.func @_double_conv_kernel(%arg0: i32, %arg1: memref<1x8x256xf32, #tpu.memory_space<vmem>>, %arg2: memref<8x72xf32, #tpu.memory_space<vmem>>, %arg3: memref<8x72xf32, #tpu.memory_space<vmem>>, %arg4: memref<3x256xf32, #tpu.memory_space<vmem>>, %arg5: memref<1x8x256xf32, #tpu.memory_space<vmem>>, %arg6: memref<8x512xf32, #tpu.memory_space<vmem>>, %arg7: memref<8x512xf32, #tpu.memory_space<vmem>>) attributes {dimension_semantics = [#tpu.dimension_semantics<parallel>], iteration_bounds = array<i64: 2>, scalar_prefetch = 0 : i64, scratch_operands = 2 : i64, tpu.core_type = #tpu.core_type<tc>, window_params = [{transform_indices = @transform_0, window_bounds = array<i64: 1, 8, 256>}, {pipeline_mode = #tpu.pipeline_mode<synchronous>, transform_indices = @transform_1, window_bounds = array<i64: 8, 72>}, {pipeline_mode = #tpu.pipeline_mode<synchronous>, transform_indices = @transform_2, window_bounds = array<i64: 8, 72>}, {pipeline_mode = #tpu.pipeline_mode<synchronous>, transform_indices = @transform_3, window_bounds = array<i64: 3, 256>}, {transform_indices = @transform_4, window_bounds = array<i64: 1, 8, 256>}]} {
    %cst = arith.constant 0.000000e+00 : f32
    %0 = vector.broadcast %cst : f32 to vector<8x512xf32>
    %c0 = arith.constant 0 : index
    %c0_0 = arith.constant 0 : index
    %1 = vector.load %arg6[%c0, %c0_0] : memref<8x512xf32, #tpu.memory_space<vmem>>, vector<8x512xf32>
    tpu.vector_store %arg6[%c0, %c0_0], %0 {strides = array<i32>} : memref<8x512xf32, #tpu.memory_space<vmem>>, vector<8x512xf32>,
    %c0_1 = arith.constant 0 : index
    %c0_2 = arith.constant 0 : index
    %c0_3 = arith.constant 0 : index
    %2 = vector.load %arg1[%c0_1, %c0_2, %c0_3] : memref<1x8x256xf32, #tpu.memory_space<vmem>>, vector<1x8x256xf32>
    %3 = vector.shape_cast %2 : vector<1x8x256xf32> to vector<8x256xf32>
    %c0_4 = arith.constant 0 : index
    %c128 = arith.constant 128 : index
    %4 = vector.load %arg6[%c0_4, %c128] : memref<8x512xf32, #tpu.memory_space<vmem>>, vector<8x256xf32>
    tpu.vector_store %arg6[%c0_4, %c128], %3 {strides = array<i32>} : memref<8x512xf32, #tpu.memory_space<vmem>>, vector<8x256xf32>,
    %c0_5 = arith.constant 0 : index
    %c0_6 = arith.constant 0 : index
    %5 = vector.load %arg2[%c0_5, %c0_6] : memref<8x72xf32, #tpu.memory_space<vmem>>, vector<8x72xf32>
    %c0_7 = arith.constant 0 : index
    %c111 = arith.constant 111 : index
    %6 = vector.load %arg6[%c0_7, %c111] : memref<8x512xf32, #tpu.memory_space<vmem>>, vector<8x256xf32>
    %c0_8 = arith.constant 0 : index
    %c0_9 = arith.constant 0 : index
    %7 = vector.load %arg4[%c0_8, %c0_9] : memref<3x256xf32, #tpu.memory_space<vmem>>, vector<1x256xf32>
    %8 = vector.broadcast %7 : vector<1x256xf32> to vector<8x256xf32>
    %9 = arith.mulf %6, %8 : vector<8x256xf32>
    %c0_10 = arith.constant 0 : index
    %c112 = arith.constant 112 : index
    %10 = vector.load %arg6[%c0_10, %c112] : memref<8x512xf32, #tpu.memory_space<vmem>>, vector<8x256xf32>
    %c0_11 = arith.constant 0 : index
    %c113 = arith.constant 113 : index
    %11 = vector.load %arg6[%c0_11, %c113] : memref<8x512xf32, #tpu.memory_space<vmem>>, vector<8x256xf32>
    %c2 = arith.constant 2 : index
    %c0_12 = arith.constant 0 : index
    %12 = vector.load %arg4[%c2, %c0_12] : memref<3x256xf32, #tpu.memory_space<vmem>>, vector<1x256xf32>
    %13 = vector.broadcast %12 : vector<1x256xf32> to vector<8x256xf32>
    %14 = arith.mulf %11, %13 : vector<8x256xf32>
    %c0_13 = arith.constant 0 : index
    %c127 = arith.constant 127 : index
    %15 = vector.load %arg6[%c0_13, %c127] : memref<8x512xf32, #tpu.memory_space<vmem>>, vector<8x256xf32>
    %c0_14 = arith.constant 0 : index
    %c0_15 = arith.constant 0 : index
    %16 = vector.load %arg4[%c0_14, %c0_15] : memref<3x256xf32, #tpu.memory_space<vmem>>, vector<1x256xf32>
    %17 = vector.broadcast %16 : vector<1x256xf32> to vector<8x256xf32>
    %18 = arith.mulf %15, %17 : vector<8x256xf32>
    %c0_16 = arith.constant 0 : index
    %c128_17 = arith.constant 128 : index
    %19 = vector.load %arg6[%c0_16, %c128_17] : memref<8x512xf32, #tpu.memory_space<vmem>>, vector<8x256xf32>
    %c0_18 = arith.constant 0 : index
    %c129 = arith.constant 129 : index
    %20 = vector.load %arg6[%c0_18, %c129] : memref<8x512xf32, #tpu.memory_space<vmem>>, vector<8x256xf32>
    %c2_19 = arith.constant 2 : index
    %c0_20 = arith.constant 0 : index
    %21 = vector.load %arg4[%c2_19, %c0_20] : memref<3x256xf32, #tpu.memory_space<vmem>>, vector<1x256xf32>
    %22 = vector.broadcast %21 : vector<1x256xf32> to vector<8x256xf32>
    %23 = arith.mulf %20, %22 : vector<8x256xf32>
    %c0_21 = arith.constant 0 : index
    %c143 = arith.constant 143 : index
    %24 = vector.load %arg6[%c0_21, %c143] : memref<8x512xf32, #tpu.memory_space<vmem>>, vector<8x256xf32>
    %c0_22 = arith.constant 0 : index
    %c0_23 = arith.constant 0 : index
    %25 = vector.load %arg4[%c0_22, %c0_23] : memref<3x256xf32, #tpu.memory_space<vmem>>, vector<1x256xf32>
    %26 = vector.broadcast %25 : vector<1x256xf32> to vector<8x256xf32>
    %27 = arith.mulf %24, %26 : vector<8x256xf32>
    %c0_24 = arith.constant 0 : index
    %c144 = arith.constant 144 : index
    %28 = vector.load %arg6[%c0_24, %c144] : memref<8x512xf32, #tpu.memory_space<vmem>>, vector<8x256xf32>
    %c0_25 = arith.constant 0 : index
    %c145 = arith.constant 145 : index
    %29 = vector.load %arg6[%c0_25, %c145] : memref<8x512xf32, #tpu.memory_space<vmem>>, vector<8x256xf32>
    %c2_26 = arith.constant 2 : index
    %c0_27 = arith.constant 0 : index
    %30 = vector.load %arg4[%c2_26, %c0_27] : memref<3x256xf32, #tpu.memory_space<vmem>>, vector<1x256xf32>
    %31 = vector.broadcast %30 : vector<1x256xf32> to vector<8x256xf32>
    %32 = arith.mulf %29, %31 : vector<8x256xf32>
    %33 = tpu.concatenate %9, %10, %14, %18, %19, %23, %27, %28, %32 in 0 : vector<8x256xf32>, vector<8x256xf32>, vector<8x256xf32>, vector<8x256xf32>, vector<8x256xf32>, vector<8x256xf32>, vector<8x256xf32>, vector<8x256xf32>, vector<8x256xf32> -> vector<72x256xf32>
    %cst_28 = arith.constant dense<0.000000e+00> : vector<8x256xf32>
    %34 = tpu.matmul %5, %33, %cst_28 {dimension_numbers = #tpu.dot_dimension_numbers<[1], [0], [0], [1], [0, 0, 1, 1], [], []>} : vector<8x72xf32>, vector<72x256xf32>, vector<8x256xf32> -> vector<8x256xf32>
    %cst_29 = arith.constant dense<0.000000e+00> : vector<8xf32>
    %35 = vector.multi_reduction <add>, %34, %cst_29 [1] : vector<8x256xf32> to vector<8xf32>
    %36 = vector.shape_cast %35 : vector<8xf32> to vector<8x1xf32>
    %cst_30 = arith.constant 3.906250e-03 : f32
    %37 = vector.broadcast %cst_30 : f32 to vector<8x1xf32>
    %38 = arith.mulf %36, %37 : vector<8x1xf32>
    %39 = vector.broadcast %38 : vector<8x1xf32> to vector<8x256xf32>
    %40 = arith.subf %34, %39 : vector<8x256xf32>
    %41 = arith.mulf %40, %40 : vector<8x256xf32>
    %cst_31 = arith.constant dense<0.000000e+00> : vector<8xf32>
    %42 = vector.multi_reduction <add>, %41, %cst_31 [1] : vector<8x256xf32> to vector<8xf32>
    %43 = vector.shape_cast %42 : vector<8xf32> to vector<8x1xf32>
    %cst_32 = arith.constant 3.906250e-03 : f32
    %44 = vector.broadcast %cst_32 : f32 to vector<8x1xf32>
    %45 = arith.mulf %43, %44 : vector<8x1xf32>
    %cst_33 = arith.constant 9.99999974E-6 : f32
    %46 = vector.broadcast %cst_33 : f32 to vector<8x1xf32>
    %47 = arith.addf %45, %46 : vector<8x1xf32>
    %48 = math.rsqrt %47 : vector<8x1xf32>
    %49 = vector.broadcast %48 : vector<8x1xf32> to vector<8x256xf32>
    %50 = arith.mulf %40, %49 : vector<8x256xf32>
    %cst_34 = arith.constant 0.000000e+00 : f32
    %51 = vector.broadcast %cst_34 : f32 to vector<8x256xf32>
    %52 = arith.cmpf oge, %50, %51 : vector<8x256xf32>
    %cst_35 = arith.constant 2.000000e-01 : f32
    %53 = vector.broadcast %cst_35 : f32 to vector<8x256xf32>
    %54 = arith.mulf %53, %50 : vector<8x256xf32>
    %55 = arith.select %52, %50, %54 : vector<8x256xi1>, vector<8x256xf32>
    %cst_36 = arith.constant 0.000000e+00 : f32
    %56 = vector.broadcast %cst_36 : f32 to vector<8x512xf32>
    %c0_37 = arith.constant 0 : index
    %c0_38 = arith.constant 0 : index
    %57 = vector.load %arg7[%c0_37, %c0_38] : memref<8x512xf32, #tpu.memory_space<vmem>>, vector<8x512xf32>
    tpu.vector_store %arg7[%c0_37, %c0_38], %56 {strides = array<i32>} : memref<8x512xf32, #tpu.memory_space<vmem>>, vector<8x512xf32>,
    %c0_39 = arith.constant 0 : index
    %c128_40 = arith.constant 128 : index
    %58 = vector.load %arg7[%c0_39, %c128_40] : memref<8x512xf32, #tpu.memory_space<vmem>>, vector<8x256xf32>
    tpu.vector_store %arg7[%c0_39, %c128_40], %55 {strides = array<i32>} : memref<8x512xf32, #tpu.memory_space<vmem>>, vector<8x256xf32>,
    %c0_41 = arith.constant 0 : index
    %c0_42 = arith.constant 0 : index
    %59 = vector.load %arg3[%c0_41, %c0_42] : memref<8x72xf32, #tpu.memory_space<vmem>>, vector<8x72xf32>
    %c0_43 = arith.constant 0 : index
    %c111_44 = arith.constant 111 : index
    %60 = vector.load %arg7[%c0_43, %c111_44] : memref<8x512xf32, #tpu.memory_space<vmem>>, vector<8x256xf32>
    %c0_45 = arith.constant 0 : index
    %c0_46 = arith.constant 0 : index
    %61 = vector.load %arg4[%c0_45, %c0_46] : memref<3x256xf32, #tpu.memory_space<vmem>>, vector<1x256xf32>
    %62 = vector.broadcast %61 : vector<1x256xf32> to vector<8x256xf32>
    %63 = arith.mulf %60, %62 : vector<8x256xf32>
    %c0_47 = arith.constant 0 : index
    %c112_48 = arith.constant 112 : index
    %64 = vector.load %arg7[%c0_47, %c112_48] : memref<8x512xf32, #tpu.memory_space<vmem>>, vector<8x256xf32>
    %c0_49 = arith.constant 0 : index
    %c113_50 = arith.constant 113 : index
    %65 = vector.load %arg7[%c0_49, %c113_50] : memref<8x512xf32, #tpu.memory_space<vmem>>, vector<8x256xf32>
    %c2_51 = arith.constant 2 : index
    %c0_52 = arith.constant 0 : index
    %66 = vector.load %arg4[%c2_51, %c0_52] : memref<3x256xf32, #tpu.memory_space<vmem>>, vector<1x256xf32>
    %67 = vector.broadcast %66 : vector<1x256xf32> to vector<8x256xf32>
    %68 = arith.mulf %65, %67 : vector<8x256xf32>
    %c0_53 = arith.constant 0 : index
    %c127_54 = arith.constant 127 : index
    %69 = vector.load %arg7[%c0_53, %c127_54] : memref<8x512xf32, #tpu.memory_space<vmem>>, vector<8x256xf32>
    %c0_55 = arith.constant 0 : index
    %c0_56 = arith.constant 0 : index
    %70 = vector.load %arg4[%c0_55, %c0_56] : memref<3x256xf32, #tpu.memory_space<vmem>>, vector<1x256xf32>
    %71 = vector.broadcast %70 : vector<1x256xf32> to vector<8x256xf32>
    %72 = arith.mulf %69, %71 : vector<8x256xf32>
    %c0_57 = arith.constant 0 : index
    %c128_58 = arith.constant 128 : index
    %73 = vector.load %arg7[%c0_57, %c128_58] : memref<8x512xf32, #tpu.memory_space<vmem>>, vector<8x256xf32>
    %c0_59 = arith.constant 0 : index
    %c129_60 = arith.constant 129 : index
    %74 = vector.load %arg7[%c0_59, %c129_60] : memref<8x512xf32, #tpu.memory_space<vmem>>, vector<8x256xf32>
    %c2_61 = arith.constant 2 : index
    %c0_62 = arith.constant 0 : index
    %75 = vector.load %arg4[%c2_61, %c0_62] : memref<3x256xf32, #tpu.memory_space<vmem>>, vector<1x256xf32>
    %76 = vector.broadcast %75 : vector<1x256xf32> to vector<8x256xf32>
    %77 = arith.mulf %74, %76 : vector<8x256xf32>
    %c0_63 = arith.constant 0 : index
    %c143_64 = arith.constant 143 : index
    %78 = vector.load %arg7[%c0_63, %c143_64] : memref<8x512xf32, #tpu.memory_space<vmem>>, vector<8x256xf32>
    %c0_65 = arith.constant 0 : index
    %c0_66 = arith.constant 0 : index
    %79 = vector.load %arg4[%c0_65, %c0_66] : memref<3x256xf32, #tpu.memory_space<vmem>>, vector<1x256xf32>
    %80 = vector.broadcast %79 : vector<1x256xf32> to vector<8x256xf32>
    %81 = arith.mulf %78, %80 : vector<8x256xf32>
    %c0_67 = arith.constant 0 : index
    %c144_68 = arith.constant 144 : index
    %82 = vector.load %arg7[%c0_67, %c144_68] : memref<8x512xf32, #tpu.memory_space<vmem>>, vector<8x256xf32>
    %c0_69 = arith.constant 0 : index
    %c145_70 = arith.constant 145 : index
    %83 = vector.load %arg7[%c0_69, %c145_70] : memref<8x512xf32, #tpu.memory_space<vmem>>, vector<8x256xf32>
    %c2_71 = arith.constant 2 : index
    %c0_72 = arith.constant 0 : index
    %84 = vector.load %arg4[%c2_71, %c0_72] : memref<3x256xf32, #tpu.memory_space<vmem>>, vector<1x256xf32>
    %85 = vector.broadcast %84 : vector<1x256xf32> to vector<8x256xf32>
    %86 = arith.mulf %83, %85 : vector<8x256xf32>
    %87 = tpu.concatenate %63, %64, %68, %72, %73, %77, %81, %82, %86 in 0 : vector<8x256xf32>, vector<8x256xf32>, vector<8x256xf32>, vector<8x256xf32>, vector<8x256xf32>, vector<8x256xf32>, vector<8x256xf32>, vector<8x256xf32>, vector<8x256xf32> -> vector<72x256xf32>
    %cst_73 = arith.constant dense<0.000000e+00> : vector<8x256xf32>
    %88 = tpu.matmul %59, %87, %cst_73 {dimension_numbers = #tpu.dot_dimension_numbers<[1], [0], [0], [1], [0, 0, 1, 1], [], []>} : vector<8x72xf32>, vector<72x256xf32>, vector<8x256xf32> -> vector<8x256xf32>
    %cst_74 = arith.constant dense<0.000000e+00> : vector<8xf32>
    %89 = vector.multi_reduction <add>, %88, %cst_74 [1] : vector<8x256xf32> to vector<8xf32>
    %90 = vector.shape_cast %89 : vector<8xf32> to vector<8x1xf32>
    %cst_75 = arith.constant 3.906250e-03 : f32
    %91 = vector.broadcast %cst_75 : f32 to vector<8x1xf32>
    %92 = arith.mulf %90, %91 : vector<8x1xf32>
    %93 = vector.broadcast %92 : vector<8x1xf32> to vector<8x256xf32>
    %94 = arith.subf %88, %93 : vector<8x256xf32>
    %95 = arith.mulf %94, %94 : vector<8x256xf32>
    %cst_76 = arith.constant dense<0.000000e+00> : vector<8xf32>
    %96 = vector.multi_reduction <add>, %95, %cst_76 [1] : vector<8x256xf32> to vector<8xf32>
    %97 = vector.shape_cast %96 : vector<8xf32> to vector<8x1xf32>
    %cst_77 = arith.constant 3.906250e-03 : f32
    %98 = vector.broadcast %cst_77 : f32 to vector<8x1xf32>
    %99 = arith.mulf %97, %98 : vector<8x1xf32>
    %cst_78 = arith.constant 9.99999974E-6 : f32
    %100 = vector.broadcast %cst_78 : f32 to vector<8x1xf32>
    %101 = arith.addf %99, %100 : vector<8x1xf32>
    %102 = math.rsqrt %101 : vector<8x1xf32>
    %103 = vector.broadcast %102 : vector<8x1xf32> to vector<8x256xf32>
    %104 = arith.mulf %94, %103 : vector<8x256xf32>
    %cst_79 = arith.constant 0.000000e+00 : f32
    %105 = vector.broadcast %cst_79 : f32 to vector<8x256xf32>
    %106 = arith.cmpf oge, %104, %105 : vector<8x256xf32>
    %cst_80 = arith.constant 2.000000e-01 : f32
    %107 = vector.broadcast %cst_80 : f32 to vector<8x256xf32>
    %108 = arith.mulf %107, %104 : vector<8x256xf32>
    %109 = arith.select %106, %104, %108 : vector<8x256xi1>, vector<8x256xf32>
    %c0_81 = arith.constant 0 : index
    %c0_82 = arith.constant 0 : index
    %c0_83 = arith.constant 0 : index
    %110 = vector.load %arg5[%c0_81, %c0_82, %c0_83] : memref<1x8x256xf32, #tpu.memory_space<vmem>>, vector<1x8x256xf32>
    %111 = vector.shape_cast %110 : vector<1x8x256xf32> to vector<8x256xf32>
    %112 = vector.shape_cast %109 : vector<8x256xf32> to vector<1x8x256xf32>
    tpu.vector_store %arg5[%c0_81, %c0_82, %c0_83], %112 {strides = array<i32>} : memref<1x8x256xf32, #tpu.memory_space<vmem>>, vector<1x8x256xf32>,
    return
  }
  func.func @transform_0(%arg0: i32) -> (i32, i32, i32) {
    %c0_i32 = arith.constant 0 : i32
    %c0_i32_0 = arith.constant 0 : i32
    %c0_i32_1 = arith.constant 0 : i32
    return %arg0, %c0_i32, %c0_i32_0 : i32, i32, i32
  }
  func.func @transform_1(%arg0: i32) -> (i32, i32) {
    %c0_i32 = arith.constant 0 : i32
    %c0_i32_0 = arith.constant 0 : i32
    %c0_i32_1 = arith.constant 0 : i32
    return %c0_i32, %c0_i32_0 : i32, i32
  }
  func.func @transform_2(%arg0: i32) -> (i32, i32) {
    %c0_i32 = arith.constant 0 : i32
    %c0_i32_0 = arith.constant 0 : i32
    %c0_i32_1 = arith.constant 0 : i32
    return %c0_i32, %c0_i32_0 : i32, i32
  }
  func.func @transform_3(%arg0: i32) -> (i32, i32) {
    %c0_i32 = arith.constant 0 : i32
    %c0_i32_0 = arith.constant 0 : i32
    %c0_i32_1 = arith.constant 0 : i32
    return %c0_i32, %c0_i32_0 : i32, i32
  }
  func.func @transform_4(%arg0: i32) -> (i32, i32, i32) {
    %c0_i32 = arith.constant 0 : i32
    %c0_i32_0 = arith.constant 0 : i32
    %c0_i32_1 = arith.constant 0 : i32
    return %arg0, %c0_i32, %c0_i32_0 : i32, i32, i32
  }
}

</mosaic_0001>

<bundles_post_ra>
// kernel: tpu_custom_call.1
= control target key start
LH: loop header
LB: loop body
LE: loop exit
PB: predicated region body
PF: predicated region fallthrough
CT: control target
= control target key end

     0   :  { %9 = vsyncpa [#allocation5], 0  ;;  %s2078_s0 = inlined_call_operand.hbm [shape: f32[2,8,256], index: 0, kind: input, shape index: {}]   ;;  %s2079_s1 = inlined_call_operand.hbm [shape: f32[8,72], index: 1, kind: input, shape index: {}]   ;;  %s2080_s2 = inlined_call_operand.hbm [shape: f32[8,72], index: 2, kind: input, shape index: {}]   ;;  %s2081_s3 = inlined_call_operand.vmem [shape: f32[3,256], index: 3, kind: input, shape index: {}]   ;;  %s2082_s4 = inlined_call_operand.hbm [shape: f32[2,8,256], index: 4, kind: output, shape index: {}]  }
   0x1   :  { %11 = vsyncpa [#allocation5 + $0x1], 0 }
   0x2   :  { %12 = vsyncpa [#allocation8], 0 }
   0x3   :  { %13 = vsyncpa [#allocation6], 0 }
   0x4   :  { %15 = vsyncpa [#allocation6 + $0x1], 0  ;;  %s1631_s15 = smov 0   ;;  %s1633_s16 = smov 0  }
   0x5   :  { %s1635_s17 = smov 0   ;;  %s1637_s18 = smov 0  }
   0x6 LB: > { %s1652_s19 = sadd.s32 4294967295, %s1587_s18   ;;  %s1101_s20 = sadd.s32 4294967294, %s1587_s18   ;;  %s1587_s18 = sphi %s1637_s18, %s2104_s18   ;;  %s1583_s17 = sphi %s1635_s17, %s2103_s17   ;;  %s1579_s16 = sphi %s1633_s16, %s2102_s16   ;;  %s1575_s15 = sphi %s1631_s15, %s2101_s15  }
   0x7   : > { %p41_p0 = scmp.ne.s32.totalorder %s1579_s16, %s1575_s15  ;;  %p2083_p1 = scmp.eq.s32.totalorder %s1652_s19, 0 }
   0x8   : > { %p134_p3 = scmp.eq.s32.totalorder %s1101_s20, 1  ;;  %p1102_p5 = scmp.ge.s32.totalorder %s1587_s18, 1 }
   0x9   : > { %p1661_p4 = por %p2083_p1, %p41_p0  ;;  %p141_p7 = scmp.lt.s32.totalorder %s1587_s18, 3 }
   0xa   : > { %p1666_p6 = por %p134_p3, %p41_p0  ;;  %s1589_s24 = smov [#allocation7]  }
   0xb   : > { %s2087_s21 = scalar_select %p1661_p4, 1, 0 }
   0xc   : > { %s2088_s22 = scalar_select %p1666_p6, 1, 0 }
   0xd   : > { %p1671_p8 = pnand %p1102_p5, %p141_p7  ;;  %s154_s25 = sshll.u32 %s1589_s24, 4  ;;  %s155_s25 = int_to_ptr.vmem [resolvable:$true] %s154_s25 }
   0xe   : > { %s1590_s26 = smov [#allocation9]   ;;  %s1687_s29 = sadd.s32 1, %s1587_s18  }
   0xf   : > { %s2089_s23 = scalar_select %p1671_p8, 1, 0 }
  0x10   : > { %p1169_p10 = pneg %p1671_p8  ;;  %s165_s27 = sshll.u32 %s1590_s26, 4  ;;  %s1684_s27 = int_to_ptr.vmem [resolvable:$true] %s165_s27 }
  0x11   : > { %s25_s30 = ssub.s32 %s1587_s18, %s1687_s29  ;;  %s1431_s7 = scalar_lea.hbm %s2079_s1, 128 }
  0x12   : > { %p1680_p11 = pnand %p1169_p10, %p2083_p1  ;;  %p1432_p12 = scmp.ne.s32.totalorder %s2079_s1, %s1431_s7 }
  0x13   : > { %p1438_p5 = scmp.lt.u32.totalorder %s1431_s7, %s2079_s1 }
  0x14   : > { %p1433_p13 = pneg %p1680_p11 }
  0x16   : > { %p1434_p0 = pnand %p1433_p13, %p1432_p12 }
  0x18   : > { %p1435_p3 = pneg %p1434_p0 }
  0x1a   : > { %p1440_p7 = pnand %p1438_p5, %p1435_p3 }
  0x1c   : > { %1443 = shalt.err (!%p1440_p7)
}
  0x1d   : > { %s1444_s12 = scalar_lea.vmem %s155_s25, 128  ;;  %p1452_p2 = scmp.lt.s32.totalorder %s155_s25, %s155_s25 }
  0x1e   : > { %p1445_p10 = scmp.ne.s32.totalorder %s155_s25, %s1444_s12  ;;  %p1453_p6 = scmp.lt.s32.totalorder %s1444_s12, %s1444_s12 }
  0x20   : > { %p1447_p9 = pnand %p1445_p10, %p1433_p13  ;;  %p1454_p4 = por %p1453_p6, %p1452_p2 }
  0x22   : > { %p1448_p1 = pneg %p1447_p9 }
  0x24   : > { %p1455_p8 = pnand %p1454_p4, %p1448_p1 }
  0x26   : > { %1458 = shalt.err (!%p1455_p8)
}
  0x27   : > { %1172 = dma.hbm_to_vmem [thread:$0]  (!%p1680_p11), %s2079_s1, 128, %s155_s25, [#allocation8]  }
  0x28   : > { %s1459_s26 = scalar_lea.hbm %s2080_s2, 128 }
  0x29   : > { %p1460_p9 = scmp.ne.s32.totalorder %s2080_s2, %s1459_s26  ;;  %p1466_p4 = scmp.lt.u32.totalorder %s1459_s26, %s2080_s2 }
  0x2b   : > { %p1462_p2 = pnand %p1460_p9, %p1433_p13 }
  0x2d   : > { %p1463_p1 = pneg %p1462_p2 }
  0x2f   : > { %p1468_p6 = pnand %p1466_p4, %p1463_p1 }
  0x31   : > { %1471 = shalt.err (!%p1468_p6)
}
  0x32   : > { %s1472_s25 = scalar_lea.vmem %s1684_s27, 128  ;;  %p1480_p3 = scmp.lt.s32.totalorder %s1684_s27, %s1684_s27 }
  0x33   : > { %p1473_p8 = scmp.ne.s32.totalorder %s1684_s27, %s1472_s25  ;;  %p1481_p5 = scmp.lt.s32.totalorder %s1472_s25, %s1472_s25 }
  0x35   : > { %p1475_p12 = pnand %p1473_p8, %p1433_p13  ;;  %p1482_p7 = por %p1481_p5, %p1480_p3 }
  0x37   : > { %p1476_p0 = pneg %p1475_p12 }
  0x39   : > { %p1483_p10 = pnand %p1482_p7, %p1476_p0 }
  0x3b   : > { %1486 = shalt.err (!%p1483_p10)
}
  0x3c   : > { %1175 = dma.hbm_to_vmem [thread:$0]  (!%p1680_p11), %s2080_s2, 128, %s1684_s27, [#allocation8]  }
  0x3d   : > { %p26_p13 = scmp.eq.s32.totalorder %s25_s30, 0  ;;  %s28_s11 = sadd.s32 1, %s1583_s17 }
  0x3e   : > { %p35_p9 = scmp.ne.s32.totalorder %s1583_s17, %s1579_s16  ;;  %p36_p2 = scmp.eq.s32.totalorder %s1587_s18, 0 }
  0x3f   : > { %s1746_s28 = scalar_select %p26_p13, %s1583_s17, %s28_s11  }
  0x40   : > { %p37_p1 = por %p36_p2, %p35_p9  ;;  %p2091_p4 = scmp.eq.s32.totalorder %s1652_s19, 1 }
  0x41   : > { %p1186_p8 = scmp.lt.s32.totalorder %s1587_s18, 2  ;;  %s179_s13 = sand.u32 1, %s1583_s17  }
  0x42   : > { %p1750_p6 = por %p2091_p4, %p35_p9  ;;  %s1106_s14 = sshll.u32 %s179_s13, 4 }
  0x43   : > { %s1123_s20 = sshll.u32 %s1587_s18, 8  ;;  %s183_s30 = scalar_lea.vmem [#allocation4], %s1106_s14 }
  0x44   : > { %s1760_s27 = scalar_lea.hbm %s2078_s0, %s1123_s20  ;;  %s191_s5 = sshll.u32 %s183_s30, 4  ;;  %s1762_s5 = int_to_ptr.vmem [resolvable:$true] %s191_s5 }
  0x45   : > { %p1764_p11 = pnand %p1186_p8, %p37_p1  ;;  %s180_s7 = scalar_lea.sflag [#allocation5], %s179_s13 }
  0x46   : > { %s1487_s8 = scalar_lea.hbm %s1760_s27, 256  ;;  %s1492_s10 = scalar_lea.hbm %s2078_s0, 512 }
  0x47   : > { %p1488_p12 = scmp.ne.s32.totalorder %s1760_s27, %s1487_s8  ;;  %p1489_p0 = pneg %p1764_p11 }
  0x48   : > { %p1493_p7 = scmp.lt.u32.totalorder %s1760_s27, %s2078_s0  ;;  %p1494_p10 = scmp.lt.u32.totalorder %s1492_s10, %s1487_s8 }
  0x49   : > { %p1490_p3 = pnand %p1489_p0, %p1488_p12  ;;  %p1496_p9 = scmp.lt.u32.totalorder %s1487_s8, %s1760_s27 }
  0x4a   : > { %p1495_p13 = por %p1494_p10, %p1493_p7 }
  0x4b   : > { %p1491_p5 = pneg %p1490_p3 }
  0x4c   : > { %p1497_p2 = por %p1496_p9, %p1495_p13 }
  0x4e   : > { %p1498_p1 = pnand %p1497_p2, %p1491_p5 }
  0x50   : > { %1501 = shalt.err (!%p1498_p1)
}
  0x51   : > { %s1502_s13 = scalar_lea.vmem %s1762_s5, 256  ;;  %s1591_s20 = smov [#allocation4]  }
  0x52   : > { %p1503_p4 = scmp.ne.s32.totalorder %s1762_s5, %s1502_s13  ;;  %s1507_s24 = sshll.u32 %s1591_s20, 4  ;;  %s1508_s24 = int_to_ptr.vmem [resolvable:$false] %s1507_s24 }
  0x53   : > { %s1509_s26 = scalar_lea.vmem %s1508_s24, 512  ;;  %p1510_p3 = scmp.lt.s32.totalorder %s1762_s5, %s1508_s24 }
  0x54   : > { %p1505_p8 = pnand %p1503_p4, %p1489_p0  ;;  %p1511_p7 = scmp.lt.s32.totalorder %s1509_s26, %s1502_s13 }
  0x56   : > { %p1506_p12 = pneg %p1505_p8  ;;  %p1512_p10 = por %p1511_p7, %p1510_p3 }
  0x58   : > { %p1513_p13 = pnand %p1512_p10, %p1506_p12 }
  0x5a   : > { %1516 = shalt.err (!%p1513_p13)
}
  0x5b   : > { %1179 = dma.hbm_to_vmem [thread:$0]  (!%p1764_p11), %s1760_s27, 256, %s1762_s5, %s180_s7  }
  0x5c   : > { %p2094_p5 = scmp.ne.s32.totalorder %s2089_s23, 0 }
  0x5d   : > { %s1796_s30 = sand.u32 (!%p2094_p5), 1, %s1579_s16   ;;  %p2095_p0 = scmp.ne.s32.totalorder (!%p2094_p5), %s2087_s21, 0 }
  0x5e   : > { %200 = sbr.rel (%p2094_p5) target bundleno = 1842 (0x732), region = 36  ;;  %s2086_s8 = sshll.u32 (!%p2094_p5), %s1796_s30, 4 }
  0x5f   : > { %s203_s25 = scalar_lea.sflag (!%p2094_p5), [#allocation5], %s1796_s30  ;;  %s1802_s9 = scalar_lea.vmem (!%p2094_p5), [#allocation4], %s2086_s8 }
  0x65   : > { %1562 = dma.done.wait (%p2095_p0), %s203_s25, 256  }
  0x66   : > { %1564 = vsyncadd (%p2095_p0), %s203_s25, 4294967040  ;;  %p2096_p11 = scmp.eq.s32.totalorder %s1652_s19, 0 }
  0x68   : > { %1566 = dma.done.wait (%p2096_p11), [#allocation8], 256   ;;  %p2097_p9 = pmov %p2096_p11 }
  0x69   : > { %v253_v0 = vlaneseq  ;;  %v1592_v1 = vmov 0.0   ;;  %v1114_v5 = vld [vmem:[%s2081_s3 + $0x2] ss:$4 sm:$0x3]  ;;  %s1593_s6 = smov 113   ;;  %s1594_s7 = smov 127  }
  0x6a   : > { %1568 = vsyncadd (%p2097_p9), [#allocation8], 4294967040  ;;  %596 = vmatprep.mubr.f32.mxu0 %v1592_v1  ;;  %966 = vmatprep.mubr.f32.mxu1 %v1592_v1  ;;  %v251_v6 = vld [vmem:[%s2081_s3] ss:$4 sm:$0x3]  ;;  %s1595_s10 = smov 1  }
  0x6b   : > { %v254_v2 = vshrl.u32 %v253_v0, 7  ;;  %s1596_s11 = smov 15   ;;  %s1597_s14 = smov 17   ;;  %v1839_v11 = vld [vmem:[%s1802_s9] sm:$0xff]  ;;  %v1842_v12 = vld [vmem:[%s1802_s9 + $0x8] sm:$0xff]  ;;  %vm300_vm0 = vcmask 1039360  }
  0x6c   : > { %s1598_s13 = smov 111   ;;  %v1237_v13 = vpack.i.bf16 %v1842_v12, %v1839_v11  ;;  %s1599_s20 = smov 112   ;;  %vm288_vm1 = vcmask 924672   ;;  %vm315_vm2 = vcmask 7168   ;;  %vm327_vm3 = vcmask 121856  }
  0x6d   : > { %v1814_v3 = vsub.s32 0, %v254_v2  ;;  %v1816_v4 = vsub.s32 1, %v254_v2  ;;  %s1600_s24 = smov 126   ;;  %s1601_s26 = smov 95   ;;  %vm339_vm4 = vcmask 138240   ;;  %vm265_vm5 = vcmask 908288  }
  0x6e   : > { %s1602_s25 = smov 110   ;;  %s1603_s9 = smov 96   ;;  %vm379_vm6 = vcmask 916480   ;;  %vm367_vm7 = vcmask 1031168   ;;  %vm420_vm8 = vcmask 777216   ;;  %vm396_vm9 = vcmask 900096  }
  0x6f   : > { %v279_v7 = vrot.slane %v1114_v5, %v1814_v3  ;;  %v256_v8 = vrot.slane %v251_v6, %v1814_v3  ;;  %v283_v9 = vrot.slane %v1114_v5, %v1816_v4  ;;  %v260_v10 = vrot.slane %v251_v6, %v1816_v4  ;;  %s1604_s23 = smov 94   ;;  %s1124_s8 = sshll.u32 %s1652_s19, 8 }
  0x70   : > { %vm408_vm10 = vcmask 785408   ;;  %vm432_vm11 = vcmask 769024   ;;  %vm528_vm12 = vcmask 588800   ;;  %s998_s19 = scalar_lea.sflag [#allocation6], %s1796_s30 }
  0x71   : > { %284 = vrot.lane.b32.xlu0 %v279_v7, %s1593_s6  ;;  %296 = vrot.lane.b32.xlu1 %v256_v8, %s1594_s7 }
  0x75   : > { %286 = vrot.lane.b32.xlu0 %v283_v9, %s1593_s6  ;;  %298 = vrot.lane.b32.xlu1 %v260_v10, %s1594_s7 }
  0x79   : > { %311 = vrot.lane.b32.xlu0 %v279_v7, %s1595_s10  ;;  %313 = vrot.lane.b32.xlu1 %v283_v9, %s1595_s10 }
  0x7d   : > { %323 = vrot.lane.b32.xlu0 %v256_v8, %s1596_s11  ;;  %325 = vrot.lane.b32.xlu1 %v260_v10, %s1596_s11 }
  0x81   : > { %335 = vrot.lane.b32.xlu0 %v279_v7, %s1597_s14  ;;  %337 = vrot.lane.b32.xlu1 %v283_v9, %s1597_s14 }
  0x85   : > { %261 = vrot.lane.b32.xlu0 %v256_v8, %s1598_s13  ;;  %263 = vrot.lane.b32.xlu1 %v260_v10, %s1598_s13 }
  0x89   : > { %1238 = vrot.lane.b32.xlu0 %v1237_v13, %s1594_s7  ;;  %350 = vrot.lane.b32.xlu1 %v1592_v1, %s1594_s7 }
  0x8d   : > { %1243 = vrot.lane.b32.xlu0 %v1237_v13, %s1598_s13 }
  0xe3   : > { %v285_v14 = vpop.permute.xlu0 %284  ;;  %v297_v15 = vpop.permute.xlu1 %296 }
  0xe4   : > { %v293_v16 = vmul.f32 0.0, %v285_v14  ;;  %v305_v17 = vmul.f32 0.0, %v297_v15 }
  0xe6   : > { %373 = vrot.lane.b32.xlu1 %v305_v17, %s1599_s20  ;;  %361 = vrot.lane.b32.xlu0 %v293_v16, %s1600_s24 }
  0xe7   : > { %v287_v18 = vpop.permute.xlu0 %286  ;;  %v299_v19 = vpop.permute.xlu1 %298 }
  0xe8   : > { %v301_v20 = vsel %vm300_vm0, %v297_v15, %v299_v19  ;;  %v307_v21 = vmul.f32 %v299_v19, %v1842_v12  ;;  %v289_v22 = vsel %vm288_vm1, %v285_v14, %v287_v18  ;;  %v295_v24 = vmul.f32 %v287_v18, %v1842_v12 }
  0xe9   : > { %v306_v23 = vmul.f32 %v301_v20, %v1839_v11  ;;  %v294_v28 = vmul.f32 %v289_v22, %v1839_v11 }
  0xea   : > { %1253 = vrot.lane.b32.xlu1 %v1237_v13, %s1601_s26 }
  0xeb   : > { %v1257_v25 = vpack.i.bf16 %v307_v21, %v306_v23  ;;  %v312_v26 = vpop.permute.xlu0 %311  ;;  %v314_v27 = vpop.permute.xlu1 %313  ;;  %v1247_v36 = vpack.i.bf16 %v295_v24, %v294_v28 }
  0xec   : > { %v320_v29 = vmul.f32 %v312_v26, %v1839_v11  ;;  %v316_v30 = vsel %vm315_vm2, %v312_v26, %v314_v27  ;;  %v322_v31 = vmul.f32 0.0, %v314_v27 }
  0xed   : > { %v321_v32 = vmul.f32 %v316_v30, %v1842_v12 }
  0xee   : > { %394 = vrot.lane.b32.xlu0 %v322_v31, %s1602_s25  ;;  %1258 = vrot.lane.b32.xlu1 %v1257_v25, %s1599_s20 }
  0xef   : > { %v324_v33 = vpop.permute.xlu0 %323  ;;  %v326_v34 = vpop.permute.xlu1 %325  ;;  %v1262_v35 = vpack.i.bf16 %v321_v32, %v320_v29 }
  0xf0   : > { %v332_v37 = vmul.f32 %v324_v33, %v1839_v11  ;;  %v328_v38 = vsel %vm327_vm3, %v324_v33, %v326_v34  ;;  %v334_v40 = vmul.f32 0.0, %v326_v34 }
  0xf1   : > { %v333_v39 = vmul.f32 %v328_v38, %v1842_v12 }
  0xf2   : > { %1263 = vrot.lane.b32.xlu1 %v1262_v35, %s1602_s25  ;;  %1248 = vrot.lane.b32.xlu0 %v1247_v36, %s1600_s24 }
  0xf3   : > { %v1267_v41 = vpack.i.bf16 %v333_v39, %v332_v37  ;;  %v336_v42 = vpop.permute.xlu0 %335  ;;  %v338_v43 = vpop.permute.xlu1 %337 }
  0xf4   : > { %v344_v44 = vmul.f32 %v336_v42, %v1839_v11  ;;  %v340_v45 = vsel %vm339_vm4, %v336_v42, %v338_v43  ;;  %v346_v49 = vmul.f32 0.0, %v338_v43 }
  0xf5   : > { %v345_v48 = vmul.f32 %v340_v45, %v1842_v12 }
  0xf6   : > { %1268 = vrot.lane.b32.xlu1 %v1267_v41, %s1603_s9  ;;  %406 = vrot.lane.b32.xlu0 %v334_v40, %s1603_s9 }
  0xf7   : > { %v262_v46 = vpop.permute.xlu0 %261  ;;  %v264_v47 = vpop.permute.xlu1 %263 }
  0xf8   : > { %v270_v50 = vmul.f32 0.0, %v262_v46  ;;  %v266_v57 = vsel %vm265_vm5, %v262_v46, %v264_v47  ;;  %v272_v0 = vmul.f32 %v264_v47, %v1842_v12 }
  0xf9   : > { %v271_v63 = vmul.f32 %v266_v57, %v1839_v11 }
  0xfa   : > { %418 = vrot.lane.b32.xlu0 %v1592_v1, %s1601_s26  ;;  %426 = vrot.lane.b32.xlu1 %v344_v44, %s1604_s23 }
  0xfb   : > { %v1239_v51 = vpop.permute.xlu0 %1238  ;;  %v351_v52 = vpop.permute.xlu1 %350  ;;  %v1287_v6 = vpack.i.bf16 %v272_v0, %v271_v63 }
  0xfc   : > { %v1241_v53 = vunpack.i.h.bf16 %v1239_v51  ;;  %v1240_v54 = vunpack.i.l.bf16 %v1239_v51 }
  0xfe   : > { %428 = vrot.lane.b32.xlu0 %v345_v48, %s1604_s23  ;;  %430 = vrot.lane.b32.xlu1 %v346_v49, %s1604_s23  ;;  %v357_v55 = vsel %vm300_vm0, %v1240_v54, %v1241_v53  ;;  %v356_v56 = vsel %vm300_vm0, %v351_v52, %v1240_v54 }
  0xff   : > { %v1272_v58 = vpack.i.bf16 %v1241_v53, %v357_v55  ;;  %v1277_v59 = vpack.i.bf16 %v356_v56, %v270_v50  ;;  %v1244_v60 = vpop.permute.xlu0 %1243 }
 0x100   : > { %v1246_v61 = vunpack.i.h.bf16 %v1244_v60  ;;  %v1245_v62 = vunpack.i.l.bf16 %v1244_v60 }
 0x102   : > { %v386_v2 = vsel %vm265_vm5, %v1245_v62, %v1246_v61  ;;  %1278 = vrot.lane.b32.xlu0 %v1277_v59, %s1597_s14  ;;  %1273 = vrot.lane.b32.xlu1 %v1272_v58, %s1597_s14 }
 0x103   : > { %v1282_v5 = vpack.i.bf16 %v1246_v61, %v386_v2 }
 0x106   : > { %1283 = vrot.lane.b32.xlu0 %v1282_v5, %s1597_s14 }
 0x10a   : > { %1288 = vrot.lane.b32.xlu0 %v1287_v6, %s1597_s14 }
 0x158   : > { %v374_v7 = vpop.permute.xlu1 %373  ;;  %v362_v8 = vpop.permute.xlu0 %361 }
 0x15c   : > { %v1254_v9 = vpop.permute.xlu1 %1253 }
 0x15d   : > { %v1256_v23 = vunpack.i.h.bf16 %v1254_v9  ;;  %v1255_v24 = vunpack.i.l.bf16 %v1254_v9 }
 0x15f   : > { %v421_v31 = vsel %vm420_vm8, %v1255_v24, %v1256_v23 }
 0x160   : > { %v395_v10 = vpop.permute.xlu0 %394  ;;  %v1259_v11 = vpop.permute.xlu1 %1258 }
 0x161   : > { %v1261_v13 = vunpack.i.h.bf16 %v1259_v11  ;;  %v1260_v12 = vunpack.i.l.bf16 %v1259_v11 }
 0x163   : > { %v381_v14 = vsel %vm379_vm6, %v1260_v12, %v1261_v13  ;;  %v380_v30 = vsel %vm379_vm6, %v374_v7, %v1260_v12 }
 0x164   : > { %v1297_v15 = vpack.i.bf16 %v1261_v13, %v381_v14  ;;  %v1264_v16 = vpop.permute.xlu1 %1263  ;;  %v1249_v17 = vpop.permute.xlu0 %1248 }
 0x165   : > { %v1265_v18 = vunpack.i.l.bf16 %v1264_v16  ;;  %v1251_v19 = vunpack.i.h.bf16 %v1249_v17  ;;  %v1250_v20 = vunpack.i.l.bf16 %v1249_v17  ;;  %v1266_v28 = vunpack.i.h.bf16 %v1264_v16 }
 0x166   : > { %1298 = vrot.lane.b32.xlu0 %v1297_v15, %s1597_s14 }
 0x167   : > { %v1302_v21 = vpack.i.bf16 %v1265_v18, %v1245_v62  ;;  %v369_v22 = vsel %vm367_vm7, %v1250_v20, %v1251_v19  ;;  %v368_v29 = vsel %vm367_vm7, %v362_v8, %v1250_v20  ;;  %v397_v37 = vsel %vm396_vm9, %v1265_v18, %v1266_v28 }
 0x168   : > { %v1292_v25 = vpack.i.bf16 %v1251_v19, %v369_v22  ;;  %v1269_v26 = vpop.permute.xlu1 %1268  ;;  %v407_v27 = vpop.permute.xlu0 %406  ;;  %v1312_v33 = vpack.i.bf16 %v380_v30, %v368_v29  ;;  %v398_v38 = vsel %vm396_vm9, %v1266_v28, %v395_v10 }
 0x169   : > { %v1271_v35 = vunpack.i.h.bf16 %v1269_v26  ;;  %v1270_v40 = vunpack.i.l.bf16 %v1269_v26  ;;  %v1317_v41 = vpack.i.bf16 %v398_v38, %v397_v37 }
 0x16a   : > { %1293 = vrot.lane.b32.xlu1 %v1292_v25, %s1597_s14  ;;  %1303 = vrot.lane.b32.xlu0 %v1302_v21, %s1597_s14 }
 0x16b   : > { %v409_v43 = vsel %vm408_vm10, %v1270_v40, %v1271_v35  ;;  %v410_v44 = vsel %vm408_vm10, %v1271_v35, %v407_v27  ;;  %v1327_v50 = vpack.i.bf16 %v1255_v24, %v1270_v40 }
 0x16c   : > { %v419_v32 = vpop.permute.xlu0 %418  ;;  %v427_v34 = vpop.permute.xlu1 %426  ;;  %v1322_v47 = vpack.i.bf16 %v410_v44, %v409_v43 }
 0x16d   : > { %v422_v36 = vsel %vm420_vm8, %v1256_v23, %v419_v32 }
 0x16e   : > { %v1307_v39 = vpack.i.bf16 %v422_v36, %v421_v31  ;;  %1313 = vrot.lane.b32.xlu1 %v1312_v33, %s1597_s14 }
 0x170   : > { %1308 = vrot.lane.b32.xlu0 %v1307_v39, %s1597_s14  ;;  %v429_v42 = vpop.permute.xlu0 %428  ;;  %v431_v46 = vpop.permute.xlu1 %430 }
 0x171   : > { %v433_v45 = vsel %vm432_vm11, %v427_v34, %v429_v42  ;;  %v434_v55 = vsel %vm432_vm11, %v429_v42, %v431_v46 }
 0x172   : > { %1318 = vrot.lane.b32.xlu1 %v1317_v41, %s1597_s14 }
 0x174   : > { %488 = vrot.lane.b32.xlu0 %v433_v45, %s1597_s14  ;;  %v1279_v48 = vpop.permute.xlu0 %1278  ;;  %v1274_v49 = vpop.permute.xlu1 %1273 }
 0x175   : > { %v1281_v52 = vunpack.i.h.bf16 %v1279_v48  ;;  %v1276_v53 = vunpack.i.h.bf16 %v1274_v49  ;;  %v1275_v54 = vunpack.i.l.bf16 %v1274_v49  ;;  %v1280_v56 = vunpack.i.l.bf16 %v1279_v48 }
 0x176   : > { %1323 = vrot.lane.b32.xlu1 %v1322_v47, %s1597_s14 }
 0x177   : > { %v495_v60 = vsel %vm339_vm4, %v1275_v54, %v1276_v53  ;;  %v494_v61 = vsel %vm339_vm4, %v1281_v52, %v1275_v54  ;;  %v247_v53 = vld [vmem:[#allocation7] sm:$0xff] }
 0x178   : > { %486 = vrot.lane.b32.xlu0 %v427_v34, %s1597_s14  ;;  %v1284_v51 = vpop.permute.xlu0 %1283 }
 0x179   : > { %v1286_v18 = vunpack.i.h.bf16 %v1284_v51  ;;  %v1285_v19 = vunpack.i.l.bf16 %v1284_v51 }
 0x17a   : > { %1328 = vrot.lane.b32.xlu1 %v1327_v50, %s1597_s14 }
 0x17b   : > { %v501_v29 = vsel %vm339_vm4, %v1285_v19, %v1286_v18 }
 0x17c   : > { %v1289_v57 = vpop.permute.xlu0 %1288 }
 0x17d   : > { %v1291_v58 = vunpack.i.h.bf16 %v1289_v57  ;;  %v1290_v59 = vunpack.i.l.bf16 %v1289_v57 }
 0x17e   : > { %490 = vrot.lane.b32.xlu1 %v434_v55, %s1597_s14 }
 0x17f   : > { %v493_v62 = vsel %vm339_vm4, %v1290_v59, %v1291_v58  ;;  %v492_v63 = vsel %vm339_vm4, %v1280_v56, %v1290_v59  ;;  %v1116_v58 = vld [vmem:[%s2081_s3 + $0x2] ss:$4 sm:$0x3] }
 0x180   : > { %v1125_v0 = vpack.c.bf16 %v495_v60, %v493_v62  ;;  %v1127_v2 = vpack.c.bf16 %v494_v61, %v492_v63  ;;  %v665_v59 = vrot.slane %v1116_v58, %v1816_v4  ;;  %v635_v60 = vld [vmem:[%s2081_s3] ss:$4 sm:$0x3]  ;;  %v661_v62 = vrot.slane %v1116_v58, %v1814_v3 }
 0x181   : > { %v640_v61 = vrot.slane %v635_v60, %v1814_v3  ;;  %v644_v3 = vrot.slane %v635_v60, %v1816_v4 }
 0x182   : > { %1126 = vmatprep.subr.bf16.mxu0 %v1125_v0 }
 0x183   : > { %1128 = vmatpush1.bf16.msra.mxu0 %v1127_v2 }
 0x1d8   : > { %v1299_v5 = vpop.permute.xlu0 %1298 }
 0x1d9   : > { %v1301_v6 = vunpack.i.h.bf16 %v1299_v5  ;;  %v1300_v7 = vunpack.i.l.bf16 %v1299_v5 }
 0x1db   : > { %v499_v12 = vsel %vm339_vm4, %v1300_v7, %v1301_v6 }
 0x1dc   : > { %v1294_v8 = vpop.permute.xlu1 %1293  ;;  %v1304_v11 = vpop.permute.xlu0 %1303 }
 0x1dd   : > { %v1296_v9 = vunpack.i.h.bf16 %v1294_v8  ;;  %v1295_v10 = vunpack.i.l.bf16 %v1294_v8  ;;  %v1305_v20 = vunpack.i.l.bf16 %v1304_v11  ;;  %v1306_v26 = vunpack.i.h.bf16 %v1304_v11 }
 0x1df   : > { %v497_v13 = vsel %vm339_vm4, %v1295_v10, %v1296_v9  ;;  %v500_v30 = vsel %vm339_vm4, %v1305_v20, %v1285_v19 }
 0x1e0   : > { %v1314_v14 = vpop.permute.xlu1 %1313  ;;  %v1129_v15 = vpack.c.bf16 %v499_v12, %v497_v13 }
 0x1e1   : > { %v1316_v16 = vunpack.i.h.bf16 %v1314_v14  ;;  %v1315_v17 = vunpack.i.l.bf16 %v1314_v14 }
 0x1e2   : > { %1130 = vmatprep.subr.bf16.mxu0 %v1129_v15  ;;  %v1309_v23 = vpop.permute.xlu0 %1308 }
 0x1e3   : > { %v496_v21 = vsel %vm339_vm4, %v1315_v17, %v1295_v10  ;;  %v498_v22 = vsel %vm339_vm4, %v1316_v16, %v1300_v7  ;;  %v1311_v31 = vunpack.i.h.bf16 %v1309_v23  ;;  %v1310_v32 = vunpack.i.l.bf16 %v1309_v23 }
 0x1e4   : > { %v1319_v24 = vpop.permute.xlu1 %1318  ;;  %v1131_v25 = vpack.c.bf16 %v498_v22, %v496_v21 }
 0x1e5   : > { %v1321_v27 = vunpack.i.h.bf16 %v1319_v24  ;;  %v1320_v28 = vunpack.i.l.bf16 %v1319_v24  ;;  %v507_v41 = vsel %vm339_vm4, %v1310_v32, %v1311_v31 }
 0x1e6   : > { %1132 = vmatpush1.bf16.msra.mxu0 %v1131_v25  ;;  %v489_v42 = vpop.permute.xlu0 %488 }
 0x1e7   : > { %v503_v33 = vsel %vm339_vm4, %v1320_v28, %v1321_v27  ;;  %v502_v34 = vsel %vm339_vm4, %v1306_v26, %v1320_v28 }
 0x1e8   : > { %v1324_v35 = vpop.permute.xlu1 %1323  ;;  %v1133_v36 = vpack.c.bf16 %v503_v33, %v501_v29  ;;  %v1135_v37 = vpack.c.bf16 %v502_v34, %v500_v30 }
 0x1e9   : > { %v1326_v38 = vunpack.i.h.bf16 %v1324_v35  ;;  %v1325_v39 = vunpack.i.l.bf16 %v1324_v35 }
 0x1ea   : > { %1134 = vmatprep.subr.bf16.mxu0 %v1133_v36  ;;  %v487_v52 = vpop.permute.xlu0 %486 }
 0x1eb   : > { %1136 = vmatpush1.bf16.msra.mxu0 %v1135_v37  ;;  %v505_v40 = vsel %vm339_vm4, %v1325_v39, %v1326_v38  ;;  %v508_v54 = vsel %vm339_vm4, %v487_v52, %v489_v42 }
 0x1ec   : > { %v1329_v43 = vpop.permute.xlu1 %1328  ;;  %v1137_v44 = vpack.c.bf16 %v507_v41, %v505_v40 }
 0x1ed   : > { %v1331_v45 = vunpack.i.h.bf16 %v1329_v43  ;;  %v1330_v46 = vunpack.i.l.bf16 %v1329_v43 }
 0x1ee   : > { %1138 = vmatprep.subr.bf16.mxu0 %v1137_v44 }
 0x1ef   : > { %v504_v47 = vsel %vm339_vm4, %v1330_v46, %v1325_v39  ;;  %v506_v48 = vsel %vm339_vm4, %v1331_v45, %v1310_v32 }
 0x1f0   : > { %v491_v49 = vpop.permute.xlu1 %490  ;;  %v1139_v50 = vpack.c.bf16 %v506_v48, %v504_v47 }
 0x1f1   : > { %v509_v51 = vsel %vm339_vm4, %v489_v42, %v491_v49 }
 0x1f2   : > { %1140 = vmatpush1.bf16.msra.mxu0 %v1139_v50 }
 0x1f3   : > { %548 = vmatprep.subr.mxu0 %v509_v51 }
 0x1f6   : > { %549 = vmatpush1.msra.mxu0 %v508_v54 }
 0x1f7   : > { %1115 = vmatmul.mubr.msk.f32.vlgmr.msra.gmra.mrb[0].mxu0 %vm528_vm12, %v247_v53 }
 0x2ca   : > { %v598_v55 = vpop.f32.mrb[0].mxu0 }
 0x2cb   : > { %v600_v56 = vpop.f32.mrb[1].mxu0 }
 0x2cc   : > { %v603_v57 = vadd.f32 %v600_v56, %v598_v55 }
 0x2ce   : > { %604 = vadd.xlane.f32.xlu1 %v603_v57 }
 0x2df   : > { %668 = vrot.lane.b32.xlu1 %v665_v59, %s1593_s6 }
 0x2e3   : > { %677 = vrot.lane.b32.xlu1 %v640_v61, %s1594_s7 }
 0x2e7   : > { %691 = vrot.lane.b32.xlu1 %v661_v62, %s1595_s10 }
 0x2eb   : > { %702 = vrot.lane.b32.xlu1 %v640_v61, %s1596_s11 }
 0x2ef   : > { %713 = vrot.lane.b32.xlu1 %v661_v62, %s1597_s14 }
 0x2f3   : > { %645 = vrot.lane.b32.xlu1 %v640_v61, %s1598_s13 }
 0x35b   : > { %v605_v63 = vpop.xlane.xlu1 %604 }
 0x35c   : > { %v606_v0 = vmul.f32 0.00390625, %v605_v63 }
 0x35e   : > { %v607_v2 = vsub.f32 %v598_v55, %v606_v0  ;;  %v608_v5 = vsub.f32 %v600_v56, %v606_v0 }
 0x35f   : > { %v669_v9 = vpop.permute.xlu1 %668 }
 0x360   : > { %v609_v6 = vmul.f32 %v607_v2, %v607_v2  ;;  %v610_v7 = vmul.f32 %v608_v5, %v608_v5 }
 0x362   : > { %v611_v8 = vadd.f32 %v610_v7, %v609_v6 }
 0x363   : > { %v678_v10 = vpop.permute.xlu1 %677 }
 0x364   : > { %612 = vadd.xlane.f32.xlu0 %v611_v8  ;;  %v685_v11 = vmul.f32 0.0, %v678_v10 }
 0x367   : > { %v692_v24 = vpop.permute.xlu1 %691 }
 0x36b   : > { %v703_v32 = vpop.permute.xlu1 %702 }
 0x36f   : > { %v714_v43 = vpop.permute.xlu1 %713 }
 0x373   : > { %v646_v50 = vpop.permute.xlu1 %645 }
 0x37a   : > { %666 = vrot.lane.b32.xlu0 %v661_v62, %s1593_s6  ;;  %s2098_s6 = sshll.u32 %s1796_s30, 4 }
 0x37e   : > { %679 = vrot.lane.b32.xlu0 %v644_v3, %s1594_s7 }
 0x382   : > { %693 = vrot.lane.b32.xlu0 %v665_v59, %s1595_s10 }
 0x386   : > { %704 = vrot.lane.b32.xlu0 %v644_v3, %s1596_s11 }
 0x38a   : > { %715 = vrot.lane.b32.xlu0 %v665_v59, %s1597_s14 }
 0x38e   : > { %647 = vrot.lane.b32.xlu0 %v644_v3, %s1598_s13 }
 0x392   : > { %727 = vrot.lane.b32.xlu0 %v1592_v1, %s1594_s7 }
 0x396   : > { %749 = vrot.lane.b32.xlu0 %v685_v11, %s1599_s20 }
 0x3f1   : > { %v613_v13 = vpop.xlane.xlu0 %612 }
 0x3f2   : > { %v614_v4 = vmul.f32 0.00390625, %v613_v13 }
 0x3f4   : > { %v615_v12 = vadd.f32 1e-05, %v614_v4 }
 0x3f5   : > { %v667_v14 = vpop.permute.xlu0 %666 }
 0x3f6   : > { %1427 = vrsqrt.f32 %v615_v12  ;;  %v674_v15 = vmul.f32 0.0, %v667_v14  ;;  %v670_v33 = vsel %vm288_vm1, %v667_v14, %v669_v9 }
 0x3f8   : > { %738 = vrot.lane.b32.xlu1 %v674_v15, %s1600_s24 }
 0x3f9   : > { %v680_v16 = vpop.permute.xlu0 %679 }
 0x3fa   : > { %v681_v27 = vsel %vm300_vm0, %v678_v10, %v680_v16 }
 0x3fd   : > { %v694_v17 = vpop.permute.xlu0 %693 }
 0x3fe   : > { %v701_v18 = vmul.f32 0.0, %v694_v17  ;;  %v695_v36 = vsel %vm315_vm2, %v692_v24, %v694_v17 }
 0x400   : > { %v1428_v19 = vpop.eup %1427  ;;  %769 = vrot.lane.b32.xlu1 %v701_v18, %s1602_s25 }
 0x401   : > { %v617_v20 = vmul.f32 %v1428_v19, %v607_v2  ;;  %v618_v21 = vmul.f32 %v1428_v19, %v608_v5  ;;  %v705_v31 = vpop.permute.xlu0 %704  ;;  %v653_v5 = vmul.f32 0.0, %v646_v50 }
 0x402   : > { %v706_v40 = vsel %vm327_vm3, %v703_v32, %v705_v31  ;;  %v712_v47 = vmul.f32 0.0, %v705_v31 }
 0x403   : > { %vm619_vm13 = vcmp.ge.f32.partialorder %v617_v20, 0.0  ;;  %vm620_vm14 = vcmp.ge.f32.partialorder %v618_v21, 0.0  ;;  %v621_v22 = vmul.f32 0.2, %v617_v20  ;;  %v622_v23 = vmul.f32 0.2, %v618_v21 }
 0x405   : > { %v623_v25 = vsel %vm619_vm13, %v617_v20, %v621_v22  ;;  %v624_v26 = vsel %vm620_vm14, %v618_v21, %v622_v23  ;;  %v716_v42 = vpop.permute.xlu0 %715 }
 0x406   : > { %v1332_v28 = vpack.i.bf16 %v624_v26, %v623_v25  ;;  %v687_v29 = vmul.f32 %v680_v16, %v624_v26  ;;  %v686_v30 = vmul.f32 %v681_v27, %v623_v25  ;;  %v675_v34 = vmul.f32 %v670_v33, %v623_v25 }
 0x407   : > { %v676_v35 = vmul.f32 %v669_v9, %v624_v26  ;;  %v699_v37 = vmul.f32 %v692_v24, %v623_v25  ;;  %v700_v38 = vmul.f32 %v695_v36, %v624_v26  ;;  %v710_v45 = vmul.f32 %v703_v32, %v623_v25 }
 0x408   : > { %1333 = vrot.lane.b32.xlu1 %v1332_v28, %s1594_s7  ;;  %1348 = vrot.lane.b32.xlu0 %v1332_v28, %s1601_s26  ;;  %v1352_v39 = vpack.i.bf16 %v687_v29, %v686_v30  ;;  %v711_v46 = vmul.f32 %v706_v40, %v624_v26  ;;  %v717_v51 = vsel %vm339_vm4, %v714_v43, %v716_v42  ;;  %v723_v54 = vmul.f32 0.0, %v716_v42  ;;  %s238_s7 = scalar_lea.vmem [#allocation10], %s2098_s6 }
 0x409   : > { %v1342_v41 = vpack.i.bf16 %v676_v35, %v675_v34  ;;  %v1357_v44 = vpack.i.bf16 %v700_v38, %v699_v37  ;;  %v648_v49 = vpop.permute.xlu0 %647  ;;  %v721_v52 = vmul.f32 %v714_v43, %v623_v25  ;;  %v722_v55 = vmul.f32 %v717_v51, %v624_v26  ;;  %s1012_s10 = sshll.u32 %s238_s7, 4  ;;  %s2036_s10 = int_to_ptr.vmem [resolvable:$true] %s1012_s10 }
 0x40a   : > { %v1362_v48 = vpack.i.bf16 %v711_v46, %v710_v45  ;;  %v649_v53 = vsel %vm265_vm5, %v646_v50, %v648_v49  ;;  %v655_v56 = vmul.f32 %v648_v49, %v624_v26 }
 0x40b   : > { %v654_v57 = vmul.f32 %v649_v53, %v623_v25 }
 0x40c   : > { %1338 = vrot.lane.b32.xlu1 %v1332_v28, %s1598_s13  ;;  %1353 = vrot.lane.b32.xlu0 %v1352_v39, %s1599_s20  ;;  %s2034_s13 = scalar_lea.hbm %s2082_s4, %s1124_s8  ;;  %s1517_s20 = scalar_lea.vmem %s2036_s10, 256 }
 0x40d   : > { %v1367_v58 = vpack.i.bf16 %v655_v56, %v654_v57  ;;  %v728_v59 = vpop.permute.xlu0 %727  ;;  %p1518_p2 = scmp.ne.s32.totalorder %s2036_s10, %s1517_s20 }
 0x40f   : > { %p1519_p1 = pnand %p1518_p2, %p1750_p6 }
 0x410   : > { %1343 = vrot.lane.b32.xlu1 %v1342_v41, %s1600_s24  ;;  %1358 = vrot.lane.b32.xlu0 %v1357_v44, %s1602_s25  ;;  %s1605_s24 = smov [#allocation10]  }
 0x411   : > { %v750_v62 = vpop.permute.xlu0 %749  ;;  %p1520_p4 = pneg %p1519_p1 }
 0x414   : > { %780 = vrot.lane.b32.xlu1 %v712_v47, %s1603_s9  ;;  %1363 = vrot.lane.b32.xlu0 %v1362_v48, %s1603_s9 }
 0x418   : > { %791 = vrot.lane.b32.xlu1 %v1592_v1, %s1601_s26  ;;  %798 = vrot.lane.b32.xlu0 %v721_v52, %s1604_s23  ;;  %s1521_s26 = sshll.u32 %s1605_s24, 4  ;;  %s1522_s26 = int_to_ptr.vmem [resolvable:$false] %s1521_s26 }
 0x419   : > { %s1523_s25 = scalar_lea.vmem %s1522_s26, 512  ;;  %p1524_p8 = scmp.lt.s32.totalorder %s2036_s10, %s1522_s26 }
 0x41a   : > { %p1525_p12 = scmp.lt.s32.totalorder %s1523_s25, %s1517_s20 }
 0x41c   : > { %800 = vrot.lane.b32.xlu1 %v722_v55, %s1604_s23  ;;  %802 = vrot.lane.b32.xlu0 %v723_v54, %s1604_s23  ;;  %p1526_p3 = por %p1525_p12, %p1524_p8 }
 0x41e   : > { %p1527_p7 = pnand %p1526_p3, %p1520_p4 }
 0x420   : > { %1368 = vrot.lane.b32.xlu1 %v1367_v58, %s1597_s14 }
 0x46a   : > { %v739_v60 = vpop.permute.xlu1 %738 }
 0x472   : > { %v770_v61 = vpop.permute.xlu1 %769 }
 0x47a   : > { %v1334_v63 = vpop.permute.xlu1 %1333  ;;  %v1349_v0 = vpop.permute.xlu0 %1348 }
 0x47b   : > { %v1336_v1 = vunpack.i.h.bf16 %v1334_v63  ;;  %v1335_v2 = vunpack.i.l.bf16 %v1334_v63  ;;  %v1351_v29 = vunpack.i.h.bf16 %v1349_v0  ;;  %v1350_v30 = vunpack.i.l.bf16 %v1349_v0 }
 0x47d   : > { %v734_v6 = vsel %vm300_vm0, %v1335_v2, %v1336_v1  ;;  %v733_v7 = vsel %vm300_vm0, %v728_v59, %v1335_v2  ;;  %v793_v40 = vsel %vm420_vm8, %v1350_v30, %v1351_v29 }
 0x47e   : > { %v1372_v8 = vpack.i.bf16 %v1336_v1, %v734_v6  ;;  %v1339_v3 = vpop.permute.xlu1 %1338  ;;  %v1377_v9 = vpack.i.bf16 %v733_v7, %v653_v5  ;;  %v1354_v10 = vpop.permute.xlu0 %1353 }
 0x47f   : > { %v1341_v11 = vunpack.i.h.bf16 %v1339_v3  ;;  %v1340_v13 = vunpack.i.l.bf16 %v1339_v3  ;;  %v1356_v4 = vunpack.i.h.bf16 %v1354_v10  ;;  %v1355_v12 = vunpack.i.l.bf16 %v1354_v10 }
 0x480   : > { %1373 = vrot.lane.b32.xlu0 %v1372_v8, %s1597_s14  ;;  %1378 = vrot.lane.b32.xlu1 %v1377_v9, %s1597_s14 }
 0x481   : > { %v761_v14 = vsel %vm265_vm5, %v1340_v13, %v1341_v11  ;;  %v756_v17 = vsel %vm379_vm6, %v1355_v12, %v1356_v4  ;;  %v755_v31 = vsel %vm379_vm6, %v750_v62, %v1355_v12 }
 0x482   : > { %v1382_v15 = vpack.i.bf16 %v1341_v11, %v761_v14  ;;  %v1344_v16 = vpop.permute.xlu1 %1343  ;;  %v1359_v18 = vpop.permute.xlu0 %1358  ;;  %v1392_v22 = vpack.i.bf16 %v1356_v4, %v756_v17 }
 0x483   : > { %v1346_v19 = vunpack.i.h.bf16 %v1344_v16  ;;  %v1345_v20 = vunpack.i.l.bf16 %v1344_v16  ;;  %v1361_v23 = vunpack.i.h.bf16 %v1359_v18  ;;  %v1360_v24 = vunpack.i.l.bf16 %v1359_v18 }
 0x484   : > { %1383 = vrot.lane.b32.xlu1 %v1382_v15, %s1597_s14 }
 0x485   : > { %v745_v21 = vsel %vm367_vm7, %v1345_v20, %v1346_v19  ;;  %v744_v27 = vsel %vm367_vm7, %v739_v60, %v1345_v20  ;;  %v1397_v32 = vpack.i.bf16 %v1360_v24, %v1340_v13  ;;  %v771_v35 = vsel %vm396_vm9, %v1360_v24, %v1361_v23 }
 0x486   : > { %v1387_v25 = vpack.i.bf16 %v1346_v19, %v745_v21  ;;  %v781_v26 = vpop.permute.xlu1 %780  ;;  %v1364_v28 = vpop.permute.xlu0 %1363  ;;  %v1407_v34 = vpack.i.bf16 %v755_v31, %v744_v27  ;;  %v772_v39 = vsel %vm396_vm9, %v1361_v23, %v770_v61 }
 0x487   : > { %v1366_v36 = vunpack.i.h.bf16 %v1364_v28  ;;  %v1365_v37 = vunpack.i.l.bf16 %v1364_v28  ;;  %v1412_v42 = vpack.i.bf16 %v772_v39, %v771_v35 }
 0x488   : > { %1388 = vrot.lane.b32.xlu0 %v1387_v25, %s1597_s14  ;;  %1393 = vrot.lane.b32.xlu1 %v1392_v22, %s1597_s14 }
 0x489   : > { %v782_v43 = vsel %vm408_vm10, %v1365_v37, %v1366_v36  ;;  %v783_v44 = vsel %vm408_vm10, %v1366_v36, %v781_v26  ;;  %v1422_v49 = vpack.i.bf16 %v1350_v30, %v1365_v37 }
 0x48a   : > { %v792_v33 = vpop.permute.xlu1 %791  ;;  %v1417_v46 = vpack.i.bf16 %v783_v44, %v782_v43  ;;  %v799_v47 = vpop.permute.xlu0 %798 }
 0x48b   : > { %v794_v38 = vsel %vm420_vm8, %v1351_v29, %v792_v33 }
 0x48c   : > { %1408 = vrot.lane.b32.xlu0 %v1407_v34, %s1597_s14  ;;  %1398 = vrot.lane.b32.xlu1 %v1397_v32, %s1597_s14  ;;  %v1402_v41 = vpack.i.bf16 %v794_v38, %v793_v40 }
 0x48e   : > { %v801_v45 = vpop.permute.xlu1 %800  ;;  %v803_v50 = vpop.permute.xlu0 %802 }
 0x48f   : > { %v804_v48 = vsel %vm432_vm11, %v799_v47, %v801_v45  ;;  %v805_v51 = vsel %vm432_vm11, %v801_v45, %v803_v50 }
 0x490   : > { %1413 = vrot.lane.b32.xlu0 %v1412_v42, %s1597_s14  ;;  %1403 = vrot.lane.b32.xlu1 %v1402_v41, %s1597_s14 }
 0x492   : > { %v1369_v52 = vpop.permute.xlu1 %1368 }
 0x493   : > { %v1371_v53 = vunpack.i.h.bf16 %v1369_v52  ;;  %v1370_v54 = vunpack.i.l.bf16 %v1369_v52  ;;  %v631_v52 = vld [vmem:[#allocation9] sm:$0xff] }
 0x494   : > { %1418 = vrot.lane.b32.xlu0 %v1417_v46, %s1597_s14  ;;  %859 = vrot.lane.b32.xlu1 %v804_v48, %s1597_s14 }
 0x495   : > { %v864_v61 = vsel %vm339_vm4, %v1370_v54, %v1371_v53 }
 0x498   : > { %1423 = vrot.lane.b32.xlu0 %v1422_v49, %s1597_s14  ;;  %857 = vrot.lane.b32.xlu1 %v799_v47, %s1597_s14 }
 0x49c   : > { %861 = vrot.lane.b32.xlu0 %v805_v51, %s1597_s14 }
 0x4f2   : > { %v1374_v55 = vpop.permute.xlu0 %1373  ;;  %v1379_v56 = vpop.permute.xlu1 %1378 }
 0x4f3   : > { %v1376_v57 = vunpack.i.h.bf16 %v1374_v55  ;;  %v1375_v58 = vunpack.i.l.bf16 %v1374_v55  ;;  %v1381_v59 = vunpack.i.h.bf16 %v1379_v56  ;;  %v1380_v60 = vunpack.i.l.bf16 %v1379_v56 }
 0x4f5   : > { %v866_v62 = vsel %vm339_vm4, %v1375_v58, %v1376_v57  ;;  %v863_v63 = vsel %vm339_vm4, %v1380_v60, %v1370_v54  ;;  %v865_v0 = vsel %vm339_vm4, %v1381_v59, %v1375_v58 }
 0x4f6   : > { %v1384_v1 = vpop.permute.xlu1 %1383  ;;  %v1141_v2 = vpack.c.bf16 %v866_v62, %v864_v61  ;;  %v1143_v5 = vpack.c.bf16 %v865_v0, %v863_v63 }
 0x4f7   : > { %v1386_v17 = vunpack.i.h.bf16 %v1384_v1  ;;  %v1385_v18 = vunpack.i.l.bf16 %v1384_v1 }
 0x4f8   : > { %1142 = vmatprep.subr.bf16.mxu1 %v1141_v2 }
 0x4f9   : > { %1144 = vmatpush1.bf16.msra.mxu1 %v1143_v5  ;;  %v872_v28 = vsel %vm339_vm4, %v1385_v18, %v1386_v17 }
 0x4fa   : > { %v1389_v6 = vpop.permute.xlu0 %1388  ;;  %v1394_v7 = vpop.permute.xlu1 %1393 }
 0x4fb   : > { %v1391_v8 = vunpack.i.h.bf16 %v1389_v6  ;;  %v1390_v3 = vunpack.i.l.bf16 %v1389_v6  ;;  %v1396_v9 = vunpack.i.h.bf16 %v1394_v7  ;;  %v1395_v10 = vunpack.i.l.bf16 %v1394_v7 }
 0x4fd   : > { %v868_v11 = vsel %vm339_vm4, %v1390_v3, %v1391_v8  ;;  %v870_v13 = vsel %vm339_vm4, %v1395_v10, %v1396_v9 }
 0x4fe   : > { %v1409_v4 = vpop.permute.xlu0 %1408  ;;  %v1399_v12 = vpop.permute.xlu1 %1398  ;;  %v1145_v14 = vpack.c.bf16 %v870_v13, %v868_v11 }
 0x4ff   : > { %v1411_v15 = vunpack.i.h.bf16 %v1409_v4  ;;  %v1410_v16 = vunpack.i.l.bf16 %v1409_v4  ;;  %v1400_v19 = vunpack.i.l.bf16 %v1399_v12  ;;  %v1401_v25 = vunpack.i.h.bf16 %v1399_v12 }
 0x500   : > { %1146 = vmatprep.subr.bf16.mxu1 %v1145_v14 }
 0x501   : > { %v867_v20 = vsel %vm339_vm4, %v1410_v16, %v1390_v3  ;;  %v869_v21 = vsel %vm339_vm4, %v1411_v15, %v1395_v10  ;;  %v871_v29 = vsel %vm339_vm4, %v1400_v19, %v1385_v18 }
 0x502   : > { %v1414_v22 = vpop.permute.xlu0 %1413  ;;  %v1404_v23 = vpop.permute.xlu1 %1403  ;;  %v1147_v24 = vpack.c.bf16 %v869_v21, %v867_v20 }
 0x503   : > { %v1416_v26 = vunpack.i.h.bf16 %v1414_v22  ;;  %v1415_v27 = vunpack.i.l.bf16 %v1414_v22  ;;  %v1406_v30 = vunpack.i.h.bf16 %v1404_v23  ;;  %v1405_v31 = vunpack.i.l.bf16 %v1404_v23 }
 0x504   : > { %1148 = vmatpush1.bf16.msra.mxu1 %v1147_v24 }
 0x505   : > { %v874_v32 = vsel %vm339_vm4, %v1415_v27, %v1416_v26  ;;  %v873_v33 = vsel %vm339_vm4, %v1401_v25, %v1415_v27  ;;  %v878_v40 = vsel %vm339_vm4, %v1405_v31, %v1406_v30 }
 0x506   : > { %v1419_v34 = vpop.permute.xlu0 %1418  ;;  %v1149_v35 = vpack.c.bf16 %v874_v32, %v872_v28  ;;  %v1151_v36 = vpack.c.bf16 %v873_v33, %v871_v29  ;;  %v860_v41 = vpop.permute.xlu1 %859 }
 0x507   : > { %v1421_v37 = vunpack.i.h.bf16 %v1419_v34  ;;  %v1420_v38 = vunpack.i.l.bf16 %v1419_v34 }
 0x508   : > { %1150 = vmatprep.subr.bf16.mxu1 %v1149_v35 }
 0x509   : > { %1152 = vmatpush1.bf16.msra.mxu1 %v1151_v36  ;;  %v876_v39 = vsel %vm339_vm4, %v1420_v38, %v1421_v37 }
 0x50a   : > { %v1424_v42 = vpop.permute.xlu0 %1423  ;;  %v1153_v43 = vpack.c.bf16 %v878_v40, %v876_v39  ;;  %v858_v51 = vpop.permute.xlu1 %857 }
 0x50b   : > { %v1426_v44 = vunpack.i.h.bf16 %v1424_v42  ;;  %v1425_v45 = vunpack.i.l.bf16 %v1424_v42  ;;  %v879_v53 = vsel %vm339_vm4, %v858_v51, %v860_v41 }
 0x50c   : > { %1154 = vmatprep.subr.bf16.mxu1 %v1153_v43 }
 0x50d   : > { %v875_v46 = vsel %vm339_vm4, %v1425_v45, %v1420_v38  ;;  %v877_v47 = vsel %vm339_vm4, %v1426_v44, %v1405_v31 }
 0x50e   : > { %v862_v48 = vpop.permute.xlu0 %861  ;;  %v1155_v49 = vpack.c.bf16 %v877_v47, %v875_v46 }
 0x50f   : > { %v880_v50 = vsel %vm339_vm4, %v860_v41, %v862_v48 }
 0x510   : > { %1156 = vmatpush1.bf16.msra.mxu1 %v1155_v49 }
 0x511   : > { %918 = vmatprep.subr.mxu1 %v880_v50 }
 0x514   : > { %919 = vmatpush1.msra.mxu1 %v879_v53 }
 0x515   : > { %1117 = vmatmul.mubr.msk.f32.vlgmr.msra.gmra.mrb[0].mxu1 %vm528_vm12, %v631_v52 }
 0x5e8   : > { %v968_v54 = vpop.f32.mrb[0].mxu1 }
 0x5e9   : > { %v970_v55 = vpop.f32.mrb[1].mxu1 }
 0x5ea   : > { %v973_v56 = vadd.f32 %v970_v55, %v968_v54 }
 0x5ec   : > { %974 = vadd.xlane.f32.xlu0 %v973_v56 }
 0x679   : > { %v975_v57 = vpop.xlane.xlu0 %974 }
 0x67a   : > { %v976_v58 = vmul.f32 0.00390625, %v975_v57 }
 0x67c   : > { %v977_v59 = vsub.f32 %v968_v54, %v976_v58  ;;  %v978_v60 = vsub.f32 %v970_v55, %v976_v58 }
 0x67e   : > { %v979_v61 = vmul.f32 %v977_v59, %v977_v59  ;;  %v980_v62 = vmul.f32 %v978_v60, %v978_v60 }
 0x680   : > { %v981_v63 = vadd.f32 %v980_v62, %v979_v61 }
 0x682   : > { %982 = vadd.xlane.f32.xlu1 %v981_v63 }
 0x70f   : > { %v983_v0 = vpop.xlane.xlu1 %982 }
 0x710   : > { %v984_v1 = vmul.f32 0.00390625, %v983_v0 }
 0x712   : > { %v985_v2 = vadd.f32 1e-05, %v984_v1 }
 0x714   : > { %1429 = vrsqrt.f32 %v985_v2 }
 0x71e   : > { %v1430_v5 = vpop.eup %1429 }
 0x71f   : > { %v987_v6 = vmul.f32 %v1430_v5, %v977_v59  ;;  %v988_v7 = vmul.f32 %v1430_v5, %v978_v60 }
 0x721   : > { %vm989_vm15 = vcmp.ge.f32.partialorder %v987_v6, 0.0  ;;  %vm990_vm0 = vcmp.ge.f32.partialorder %v988_v7, 0.0  ;;  %v991_v8 = vmul.f32 0.2, %v987_v6  ;;  %v992_v3 = vmul.f32 0.2, %v988_v7 }
 0x723   : > { %v993_v9 = vsel %vm989_vm15, %v987_v6, %v991_v8  ;;  %v994_v10 = vsel %vm990_vm0, %v988_v7, %v992_v3 }
 0x724   : > { %995 = vst [vmem:[%s238_s7] sm:$0xff] %v993_v9  ;;  %996 = vst [vmem:[%s238_s7 + $0x8] sm:$0xff] %v994_v10 }
 0x725   : > { %1530 = shalt.err (!%p1527_p7)
}
 0x726   : > { %s1531_s30 = scalar_lea.hbm %s2034_s13, 256  ;;  %s1535_s21 = scalar_lea.hbm %s2082_s4, 512 }
 0x727   : > { %p1532_p10 = scmp.ne.s32.totalorder %s2034_s13, %s1531_s30  ;;  %p1536_p0 = scmp.lt.u32.totalorder %s2034_s13, %s2082_s4 }
 0x728   : > { %p1537_p11 = scmp.lt.u32.totalorder %s1535_s21, %s1531_s30  ;;  %p1539_p2 = scmp.lt.u32.totalorder %s1531_s30, %s2034_s13 }
 0x729   : > { %p1533_p13 = pnand %p1532_p10, %p1750_p6 }
 0x72a   : > { %p1538_p9 = por %p1537_p11, %p1536_p0 }
 0x72b   : > { %p1534_p5 = pneg %p1533_p13 }
 0x72c   : > { %p1540_p1 = por %p1539_p2, %p1538_p9 }
 0x72e   : > { %p1541_p4 = pnand %p1540_p1, %p1534_p5 }
 0x730   : > { %1544 = shalt.err (!%p1541_p4)
}
 0x731   : > { %1167 = dma.vmem_to_hbm [thread:$0]  (%p1750_p6), %s2036_s10, 256, %s2034_s13, %s998_s19  }
 0x732 PF: > { %s1024_s8 = sand.u32 1, %s1575_s15   ;;  %p2099_p8 = scmp.ne.s32.totalorder %s2088_s22, 0 }
 0x733   : > { %p2100_p12 = scmp.ge.s32.totalorder %s1587_s18, 2  ;;  %s1025_s6 = scalar_lea.sflag [#allocation6], %s1024_s8 }
 0x735   : > { %p1181_p3 = pnand %p2100_p12, %p2099_p8 }
 0x737   : > { %1570 = dma.done.wait (!%p1181_p3), %s1025_s6, 256  }
 0x738   : > { %1572 = vsyncadd (!%p1181_p3), %s1025_s6, 4294967040  ;;  %p18_p7 = scmp.ge.s32.totalorder %s1687_s29, 4   ;;  %s2101_s15 = smov %s1579_s16 }
 0x739   : > { %s2102_s16 = smov %s1583_s17  ;;  %s2103_s17 = smov %s1746_s28 }
 0x73a   : > { %s2104_s18 = smov %s1687_s29  ;;  %20 = sbr.rel (!%p18_p7) target bundleno = 6 (0x6), region = 90 }
 0x741   :  { %1030 = vsyncpa [#allocation5], 1 }
 0x742   :  { %1032 = vsyncpa [#allocation5 + $0x1], 1 }
 0x743   :  { %1033 = vsyncpa [#allocation8], 1 }
 0x744   :  { %1034 = vsyncpa [#allocation6], 1 }
 0x745   :  { %1036 = vsyncpa [#allocation6 + $0x1], 1 }

</bundles_post_ra>
